<compile_context>
chip_gen: v6e
topology: v6e:2x2x1
jax: 0.10.0
libtpu: 0.0.40
codegen_flags: <defaults>
</compile_context>

<pallas_src>
import functools
import math

import jax
import jax.numpy as jnp
import numpy as np
from jax import lax
from jax.experimental import pallas as pl
from jax.experimental.pallas import tpu as pltpu

LN_EPS = 1e-5


# ----------------------------- in-kernel helpers -----------------------------
def _layernorm(x, w, b):
    mu = jnp.mean(x, axis=-1, keepdims=True)
    var = jnp.mean((x - mu) ** 2, axis=-1, keepdims=True)
    return (x - mu) * lax.rsqrt(var + LN_EPS) * w + b


# ------------------------------- fused kernel --------------------------------
def fused_stack_kernel(x_ref, mask_ref,
                       ln1w, ln1b, wqkv, bqkv, wo, bo,
                       ln2w, ln2b, w1, b1, w2, b2,
                       lnfw, lnfb, proj,
                       out_ref, res_ref,
                       *, num_heads, seq_len, tok):
    """Grid = (batch_tiles, L).  One ResidualAttentionBlock per (b, l) step.

    res_ref (VMEM scratch) holds the f32 residual stream for the whole stack;
    it is initialized from HBM at l == 0 and never written back to HBM.  The
    only HBM output is the final (Bt, E) text features, written at l == L-1.
    """
    l = pl.program_id(1)
    n_layers = pl.num_programs(1)
    S = seq_len
    rows, D = res_ref.shape
    Bt = rows // S
    hd = D // num_heads

    @pl.when(l == 0)
    def _():
        res_ref[...] = x_ref[...]

    x = res_ref[...]                                   # (Bt*S, D) f32

    # ------------------ attention branch: x + MHA(LN1(x)) -------------------
    h = _layernorm(x, ln1w[0], ln1b[0]).astype(jnp.bfloat16)
    qkv = jnp.dot(h, wqkv[0], preferred_element_type=jnp.float32) + bqkv[0]
    qkv = qkv.astype(jnp.bfloat16)                     # single cast, hoisted
    mask = mask_ref[...]                               # (S, S) f32, cached input

    batch_outs = []
    for bb in range(Bt):                               # static loops (small)
        r0 = bb * S
        head_outs = []
        for hh in range(num_heads):
            q = qkv[r0:r0 + S, hh * hd:(hh + 1) * hd]
            k = qkv[r0:r0 + S, D + hh * hd:D + (hh + 1) * hd]
            v = qkv[r0:r0 + S, 2 * D + hh * hd:2 * D + (hh + 1) * hd]
            # 1/sqrt(hd) is already folded into the q columns of wqkv/bqkv.
            s = lax.dot_general(q, k, (((1,), (1,)), ((), ())),
                                preferred_element_type=jnp.float32) + mask
            s = s - jnp.max(s, axis=-1, keepdims=True)
            p = jnp.exp(s)                             # unnormalized, f32
            lsum = jnp.sum(p, axis=-1, keepdims=True)  # (S, 1)
            pv = jnp.dot(p.astype(jnp.bfloat16), v,
                         preferred_element_type=jnp.float32)
            # normalize the (S, hd) output instead of the (S, S) matrix
            head_outs.append(pv * (1.0 / lsum))
        batch_outs.append(jnp.concatenate(head_outs, axis=-1))
    attn = jnp.concatenate(batch_outs, axis=0).astype(jnp.bfloat16)   # (Bt*S, D)

    x = x + jnp.dot(attn, wo[0], preferred_element_type=jnp.float32) + bo[0]

    # ---------------------- MLP branch: x + MLP(LN2(x)) ---------------------
    h2 = _layernorm(x, ln2w[0], ln2b[0]).astype(jnp.bfloat16)
    a = jnp.dot(h2, w1[0], preferred_element_type=jnp.float32) + b1[0]
    # QuickGELU kept in f32 (safe on v5e; flip to bf16 on v6e/v7x if desired)
    a = (a * jax.nn.sigmoid(1.702 * a)).astype(jnp.bfloat16)
    y = jnp.dot(a, w2[0], preferred_element_type=jnp.float32) + b2[0]
    x = x + y
    res_ref[...] = x

    # ---------- last layer: ln_final + gather(n_ctx+1) + projection ---------
    @pl.when(l == n_layers - 1)
    def _():
        toks = [x[bb * S + tok:bb * S + tok + 1, :] for bb in range(Bt)]
        t = jnp.concatenate(toks, axis=0)              # (Bt, D) f32
        ht = _layernorm(t, lnfw[...], lnfb[...]).astype(jnp.bfloat16)
        out_ref[...] = jnp.dot(ht, proj[...], preferred_element_type=jnp.float32)


# --------------------------------- wrapper ------------------------------------
def prepare_params(layer_params, lnf_w, lnf_b, proj, num_heads):
    """Stack per-layer params into (L, ...) arrays, fold 1/sqrt(head_dim) into
    the q columns, and cast matmul weights to bf16 once."""
    D = layer_params[0]["wqkv"].shape[0]
    hd = D // num_heads
    scale = 1.0 / math.sqrt(hd)
    col_scale = jnp.concatenate([jnp.full((D,), scale, jnp.float32),
                                 jnp.ones((2 * D,), jnp.float32)])

    def stack(key):
        return jnp.stack([p[key] for p in layer_params], axis=0)

    return dict(
        ln1_w=stack("ln1_w"), ln1_b=stack("ln1_b"),
        wqkv=(stack("wqkv") * col_scale[None, None, :]).astype(jnp.bfloat16),
        bqkv=stack("bqkv") * col_scale[None, None, :],
        wo=stack("wo").astype(jnp.bfloat16), bo=stack("bo"),
        ln2_w=stack("ln2_w"), ln2_b=stack("ln2_b"),
        w1=stack("w1").astype(jnp.bfloat16), b1=stack("b1"),
        w2=stack("w2").astype(jnp.bfloat16), b2=stack("b2"),
        lnf_w=lnf_w, lnf_b=lnf_b,
        proj_bf=proj.astype(jnp.bfloat16),
    )


@functools.partial(jax.jit, static_argnames=("n_ctx", "num_heads", "batch_tile"))
def text_encoder_forward(prompts, params, *, n_ctx, num_heads, batch_tile=None):
    B, S, D = prompts.shape
    E = params["proj_bf"].shape[1]
    L = params["wqkv"].shape[0]
    H4 = params["w1"].shape[2]
    Bt = B if batch_tile is None else batch_tile
    assert B % Bt == 0, "batch_tile must divide batch"
    nb = B // Bt
    tok = n_ctx + 1
    # TODO(synk): gather position n_ctx+1 assumes a fixed EOT index (matches the
    # module's forward); CLIP's usual argmax-over-token-ids gather is not used here.

    x_flat = prompts.astype(jnp.float32).reshape(B * S, D)
    row = lax.broadcasted_iota(jnp.int32, (S, S), 0)
    col = lax.broadcasted_iota(jnp.int32, (S, S), 1)
    mask = jnp.where(col <= row, 0.0, -1e30).astype(jnp.float32)

    def wspec(shape):           # per-layer weight: streamed along the l axis
        nd = len(shape)
        return pl.BlockSpec((1,) + shape[1:], lambda b, l, _nd=nd: (l,) + (0,) * (_nd - 1))

    def cspec(shape):           # constant (replicated) input: fetched once
        nd = len(shape)
        return pl.BlockSpec(shape, lambda b, l, _nd=nd: (0,) * _nd)

    # advisory cost estimate for XLA scheduling
    flops = L * B * (2 * S * D * 3 * D + 4 * S * S * D + 2 * S * D * D
                     + 4 * S * D * H4) + 2 * B * D * E
    transc = L * B * (num_heads * S * S + S * H4)
    w_bytes = 2 * (D * 3 * D + D * D + 2 * D * H4) + 4 * (7 * D + 3 * D + H4)
    bytes_accessed = B * S * D * 4 + B * E * 4 + nb * L * w_bytes \
        + S * S * 4 + D * E * 2 + 2 * D * 4
    ce = pl.CostEstimate(flops=flops, transcendentals=transc,
                         bytes_accessed=bytes_accessed)

    kernel = functools.partial(fused_stack_kernel, num_heads=num_heads,
                               seq_len=S, tok=tok)

    return pl.pallas_call(
        kernel,
        out_shape=jax.ShapeDtypeStruct((B, E), jnp.float32),
        grid=(nb, L),
        in_specs=[
            pl.BlockSpec((Bt * S, D), lambda b, l: (b, 0)),    # x (read at l==0)
            cspec((S, S)),                                     # causal mask bias
            wspec(params["ln1_w"].shape), wspec(params["ln1_b"].shape),
            wspec(params["wqkv"].shape), wspec(params["bqkv"].shape),
            wspec(params["wo"].shape), wspec(params["bo"].shape),
            wspec(params["ln2_w"].shape), wspec(params["ln2_b"].shape),
            wspec(params["w1"].shape), wspec(params["b1"].shape),
            wspec(params["w2"].shape), wspec(params["b2"].shape),
            cspec(params["lnf_w"].shape), cspec(params["lnf_b"].shape),
            cspec(params["proj_bf"].shape),
        ],
        out_specs=pl.BlockSpec((Bt, E), lambda b, l: (b, 0)),
        scratch_shapes=[pltpu.VMEM((Bt * S, D), jnp.float32)],  # residual stream
        compiler_params=pltpu.CompilerParams(
            dimension_semantics=("parallel", "arbitrary"),
            vmem_limit_bytes=32 * 1024 * 1024),
        cost_estimate=ce,
    )(x_flat, mask,
      params["ln1_w"], params["ln1_b"], params["wqkv"], params["bqkv"],
      params["wo"], params["bo"], params["ln2_w"], params["ln2_b"],
      params["w1"], params["b1"], params["w2"], params["b2"],
      params["lnf_w"], params["lnf_b"], params["proj_bf"])


# --------------------------- pure-JAX reference check ------------------------
# Uses the SAME prepared (stacked / q-scaled / bf16) weights and the same
# mixed-precision op order as the kernel, so the comparison isolates
# structural/plumbing bugs rather than dtype rounding.
def reference_forward(prompts, params, n_ctx, num_heads):
    x = prompts.astype(jnp.float32)
    B, S, D = x.shape
    hd = D // num_heads
    L = params["wqkv"].shape[0]
    row = lax.broadcasted_iota(jnp.int32, (S, S), 0)
    col = lax.broadcasted_iota(jnp.int32, (S, S), 1)
    bias = jnp.where(col <= row, 0.0, -1e30).astype(jnp.float32)
    for l in range(L):
        h = _layernorm(x, params["ln1_w"][l], params["ln1_b"][l]).astype(jnp.bfloat16)
        qkv = jnp.dot(h, params["wqkv"][l],
                      preferred_element_type=jnp.float32) + params["bqkv"][l]
        qkv = qkv.astype(jnp.bfloat16)
        q = qkv[..., :D].reshape(B, S, num_heads, hd)
        k = qkv[..., D:2 * D].reshape(B, S, num_heads, hd)
        v = qkv[..., 2 * D:].reshape(B, S, num_heads, hd)
        s = jnp.einsum("bqhd,bkhd->bhqk", q, k, preferred_element_type=jnp.float32)
        s = s + bias[None, None]
        s = s - s.max(-1, keepdims=True)
        p = jnp.exp(s)
        lsum = p.sum(-1, keepdims=True)                     # (B, H, S, 1)
        o = jnp.einsum("bhqk,bkhd->bqhd", p.astype(jnp.bfloat16), v,
                       preferred_element_type=jnp.float32)
        o = o * (1.0 / jnp.transpose(lsum, (0, 2, 1, 3)))   # normalize after p@v
        o = o.reshape(B, S, D).astype(jnp.bfloat16)
        x = x + jnp.dot(o, params["wo"][l],
                        preferred_element_type=jnp.float32) + params["bo"][l]
        h2 = _layernorm(x, params["ln2_w"][l], params["ln2_b"][l]).astype(jnp.bfloat16)
        a = jnp.dot(h2, params["w1"][l],
                    preferred_element_type=jnp.float32) + params["b1"][l]
        a = (a * jax.nn.sigmoid(1.702 * a)).astype(jnp.bfloat16)
        x = x + jnp.dot(a, params["w2"][l],
                        preferred_element_type=jnp.float32) + params["b2"][l]
    xt = x[:, n_ctx + 1, :]
    ht = _layernorm(xt, params["lnf_w"], params["lnf_b"]).astype(jnp.bfloat16)
    return jnp.dot(ht, params["proj_bf"], preferred_element_type=jnp.float32)


# ------------------------------------ main ------------------------------------
def init_params(key, layers, width, embed_dim):
    params = []
    for _ in range(layers):
        key, k0, k1, k2, k3, k4, k5, k6, k7 = jax.random.split(key, 9)
        params.append(dict(
            ln1_w=jnp.ones((1, width), jnp.float32),
            ln1_b=0.01 * jax.random.normal(k0, (1, width), jnp.float32),
            wqkv=0.02 * jax.random.normal(k1, (width, 3 * width), jnp.float32),
            bqkv=0.01 * jax.random.normal(k2, (1, 3 * width), jnp.float32),
            wo=0.02 * jax.random.normal(k3, (width, width), jnp.float32),
            bo=0.01 * jax.random.normal(k4, (1, width), jnp.float32),
            ln2_w=jnp.ones((1, width), jnp.float32),
            ln2_b=0.01 * jax.random.normal(k5, (1, width), jnp.float32),
            w1=0.02 * jax.random.normal(k6, (width, 4 * width), jnp.float32),
            b1=jnp.zeros((1, 4 * width), jnp.float32),
            w2=0.02 * jax.random.normal(k7, (4 * width, width), jnp.float32),
            b2=jnp.zeros((1, width), jnp.float32),
        ))
    key, kp = jax.random.split(key)
    lnf_w = jnp.ones((1, width), jnp.float32)
    lnf_b = jnp.zeros((1, width), jnp.float32)
    proj = (width ** -0.5) * jax.random.normal(kp, (width, embed_dim), jnp.float32)
    return params, lnf_w, lnf_b, proj


if __name__ == "__main__":
    B, S, D = 2, 8, 32        # batch, context length, transformer width
    LAYERS, HEADS, EMBED = 2, 4, 32
    N_CTX = 4                 # gather position n_ctx + 1 = 5 (< S)

    key = jax.random.PRNGKey(0)
    key, kx = jax.random.split(key)
    prompts = jax.random.normal(kx, (B, S, D), jnp.float32)

    layer_params, lnf_w, lnf_b, proj = init_params(key, LAYERS, D, EMBED)
    params = prepare_params(layer_params, lnf_w, lnf_b, proj, HEADS)

    out = text_encoder_forward(prompts, params, n_ctx=N_CTX, num_heads=HEADS)
    out = jax.block_until_ready(out)

    ref = jax.block_until_ready(reference_forward(prompts, params, N_CTX, HEADS))

    assert out.shape == (B, EMBED), out.shape
    np.testing.assert_allclose(np.asarray(out), np.asarray(ref), rtol=3e-3, atol=3e-3)
    print("KERNEL_OK")
</pallas_src>

<mosaic_0001>
module attributes {stable_mosaic.version = 11 : i64} {
  func.func @fused_stack_kernel(%arg0: i32, %arg1: i32, %arg2: memref<16x32xf32, #tpu.memory_space<vmem>>, %arg3: memref<8x8xf32, #tpu.memory_space<vmem>>, %arg4: memref<1x1x32xf32, #tpu.memory_space<vmem>>, %arg5: memref<1x1x32xf32, #tpu.memory_space<vmem>>, %arg6: memref<1x32x96xbf16, #tpu.memory_space<vmem>>, %arg7: memref<1x1x96xf32, #tpu.memory_space<vmem>>, %arg8: memref<1x32x32xbf16, #tpu.memory_space<vmem>>, %arg9: memref<1x1x32xf32, #tpu.memory_space<vmem>>, %arg10: memref<1x1x32xf32, #tpu.memory_space<vmem>>, %arg11: memref<1x1x32xf32, #tpu.memory_space<vmem>>, %arg12: memref<1x32x128xbf16, #tpu.memory_space<vmem>>, %arg13: memref<1x1x128xf32, #tpu.memory_space<vmem>>, %arg14: memref<1x128x32xbf16, #tpu.memory_space<vmem>>, %arg15: memref<1x1x32xf32, #tpu.memory_space<vmem>>, %arg16: memref<1x32xf32, #tpu.memory_space<vmem>>, %arg17: memref<1x32xf32, #tpu.memory_space<vmem>>, %arg18: memref<32x32xbf16, #tpu.memory_space<vmem>>, %arg19: memref<2x32xf32, #tpu.memory_space<vmem>>, %arg20: memref<16x32xf32, #tpu.memory_space<vmem>>) attributes {dimension_semantics = [#tpu.dimension_semantics<parallel>, #tpu.dimension_semantics<arbitrary>], iteration_bounds = array<i64: 1, 2>, scalar_prefetch = 0 : i64, scratch_operands = 1 : i64, tpu.core_type = #tpu.core_type<tc>, window_params = [{transform_indices = @transform_0, window_bounds = array<i64: 16, 32>}, {pipeline_mode = #tpu.pipeline_mode<synchronous>, transform_indices = @transform_1, window_bounds = array<i64: 8, 8>}, {transform_indices = @transform_2, window_bounds = array<i64: 1, 1, 32>}, {transform_indices = @transform_3, window_bounds = array<i64: 1, 1, 32>}, {transform_indices = @transform_4, window_bounds = array<i64: 1, 32, 96>}, {transform_indices = @transform_5, window_bounds = array<i64: 1, 1, 96>}, {transform_indices = @transform_6, window_bounds = array<i64: 1, 32, 32>}, {transform_indices = @transform_7, window_bounds = array<i64: 1, 1, 32>}, {transform_indices = @transform_8, window_bounds = array<i64: 1, 1, 32>}, {transform_indices = @transform_9, window_bounds = array<i64: 1, 1, 32>}, {transform_indices = @transform_10, window_bounds = array<i64: 1, 32, 128>}, {transform_indices = @transform_11, window_bounds = array<i64: 1, 1, 128>}, {transform_indices = @transform_12, window_bounds = array<i64: 1, 128, 32>}, {transform_indices = @transform_13, window_bounds = array<i64: 1, 1, 32>}, {pipeline_mode = #tpu.pipeline_mode<synchronous>, transform_indices = @transform_14, window_bounds = array<i64: 1, 32>}, {pipeline_mode = #tpu.pipeline_mode<synchronous>, transform_indices = @transform_15, window_bounds = array<i64: 1, 32>}, {pipeline_mode = #tpu.pipeline_mode<synchronous>, transform_indices = @transform_16, window_bounds = array<i64: 32, 32>}, {transform_indices = @transform_17, window_bounds = array<i64: 2, 32>}]} {
    %c0_i32 = arith.constant 0 : i32
    %0 = arith.cmpi eq, %arg1, %c0_i32 : i32
    %1 = arith.extui %0 : i1 to i32
    %c0_i32_0 = arith.constant 0 : i32
    %2 = arith.cmpi ne, %1, %c0_i32_0 : i32
    scf.if %2 {
      %c0_98 = arith.constant 0 : index
      %c0_99 = arith.constant 0 : index
      %251 = vector.load %arg2[%c0_98, %c0_99] : memref<16x32xf32, #tpu.memory_space<vmem>>, vector<16x32xf32>
      %c0_100 = arith.constant 0 : index
      %c0_101 = arith.constant 0 : index
      %252 = vector.load %arg20[%c0_100, %c0_101] : memref<16x32xf32, #tpu.memory_space<vmem>>, vector<16x32xf32>
      tpu.vector_store %arg20[%c0_100, %c0_101], %251 {strides = array<i32>} : memref<16x32xf32, #tpu.memory_space<vmem>>, vector<16x32xf32>,
    } else {
    }
    %c0 = arith.constant 0 : index
    %c0_1 = arith.constant 0 : index
    %3 = vector.load %arg20[%c0, %c0_1] : memref<16x32xf32, #tpu.memory_space<vmem>>, vector<16x32xf32>
    %c0_2 = arith.constant 0 : index
    %c0_3 = arith.constant 0 : index
    %c0_4 = arith.constant 0 : index
    %4 = vector.load %arg4[%c0_2, %c0_3, %c0_4] : memref<1x1x32xf32, #tpu.memory_space<vmem>>, vector<1x1x32xf32>
    %5 = vector.shape_cast %4 : vector<1x1x32xf32> to vector<1x32xf32>
    %c0_5 = arith.constant 0 : index
    %c0_6 = arith.constant 0 : index
    %c0_7 = arith.constant 0 : index
    %6 = vector.load %arg5[%c0_5, %c0_6, %c0_7] : memref<1x1x32xf32, #tpu.memory_space<vmem>>, vector<1x1x32xf32>
    %7 = vector.shape_cast %6 : vector<1x1x32xf32> to vector<1x32xf32>
    %cst = arith.constant dense<0.000000e+00> : vector<16xf32>
    %8 = vector.multi_reduction <add>, %3, %cst [1] : vector<16x32xf32> to vector<16xf32>
    %9 = vector.shape_cast %8 : vector<16xf32> to vector<16x1xf32>
    %cst_8 = arith.constant 3.200000e+01 : f32
    %10 = vector.broadcast %cst_8 : f32 to vector<16x1xf32>
    %11 = arith.divf %9, %10 : vector<16x1xf32>
    %12 = vector.broadcast %11 : vector<16x1xf32> to vector<16x32xf32>
    %13 = arith.subf %3, %12 : vector<16x32xf32>
    %14 = arith.mulf %13, %13 : vector<16x32xf32>
    %cst_9 = arith.constant dense<0.000000e+00> : vector<16xf32>
    %15 = vector.multi_reduction <add>, %14, %cst_9 [1] : vector<16x32xf32> to vector<16xf32>
    %16 = vector.shape_cast %15 : vector<16xf32> to vector<16x1xf32>
    %cst_10 = arith.constant 3.200000e+01 : f32
    %17 = vector.broadcast %cst_10 : f32 to vector<16x1xf32>
    %18 = arith.divf %16, %17 : vector<16x1xf32>
    %19 = vector.broadcast %11 : vector<16x1xf32> to vector<16x32xf32>
    %20 = arith.subf %3, %19 : vector<16x32xf32>
    %cst_11 = arith.constant 9.99999974E-6 : f32
    %21 = vector.broadcast %cst_11 : f32 to vector<16x1xf32>
    %22 = arith.addf %18, %21 : vector<16x1xf32>
    %23 = math.rsqrt %22 : vector<16x1xf32>
    %24 = vector.broadcast %23 : vector<16x1xf32> to vector<16x32xf32>
    %25 = arith.mulf %20, %24 : vector<16x32xf32>
    %26 = vector.broadcast %5 : vector<1x32xf32> to vector<16x32xf32>
    %27 = arith.mulf %25, %26 : vector<16x32xf32>
    %28 = vector.broadcast %7 : vector<1x32xf32> to vector<16x32xf32>
    %29 = arith.addf %27, %28 : vector<16x32xf32>
    %30 = arith.truncf %29 : vector<16x32xf32> to vector<16x32xbf16>
    %c0_12 = arith.constant 0 : index
    %c0_13 = arith.constant 0 : index
    %c0_14 = arith.constant 0 : index
    %31 = vector.load %arg6[%c0_12, %c0_13, %c0_14] : memref<1x32x96xbf16, #tpu.memory_space<vmem>>, vector<1x32x96xbf16>
    %32 = vector.shape_cast %31 : vector<1x32x96xbf16> to vector<32x96xbf16>
    %cst_15 = arith.constant dense<0.000000e+00> : vector<16x96xf32>
    %33 = tpu.matmul %30, %32, %cst_15 {dimension_numbers = #tpu.dot_dimension_numbers<[1], [0], [0], [1], [0, 0, 1, 1], [], []>} : vector<16x32xbf16>, vector<32x96xbf16>, vector<16x96xf32> -> vector<16x96xf32>
    %c0_16 = arith.constant 0 : index
    %c0_17 = arith.constant 0 : index
    %c0_18 = arith.constant 0 : index
    %34 = vector.load %arg7[%c0_16, %c0_17, %c0_18] : memref<1x1x96xf32, #tpu.memory_space<vmem>>, vector<1x1x96xf32>
    %35 = vector.shape_cast %34 : vector<1x1x96xf32> to vector<1x96xf32>
    %36 = vector.broadcast %35 : vector<1x96xf32> to vector<16x96xf32>
    %37 = arith.addf %33, %36 : vector<16x96xf32>
    %38 = arith.truncf %37 : vector<16x96xf32> to vector<16x96xbf16>
    %c0_19 = arith.constant 0 : index
    %c0_20 = arith.constant 0 : index
    %39 = vector.load %arg3[%c0_19, %c0_20] : memref<8x8xf32, #tpu.memory_space<vmem>>, vector<8x8xf32>
    %40 = vector.extract_strided_slice %38 {offsets = [0, 0], sizes = [8, 8], strides = [1, 1]} : vector<16x96xbf16> to vector<8x8xbf16>
    %41 = vector.extract_strided_slice %38 {offsets = [0, 32], sizes = [8, 8], strides = [1, 1]} : vector<16x96xbf16> to vector<8x8xbf16>
    %42 = vector.extract_strided_slice %38 {offsets = [0, 64], sizes = [8, 8], strides = [1, 1]} : vector<16x96xbf16> to vector<8x8xbf16>
    %cst_21 = arith.constant dense<0.000000e+00> : vector<8x8xf32>
    %43 = tpu.matmul %40, %41, %cst_21 {dimension_numbers = #tpu.dot_dimension_numbers<[1], [1], [0], [0], [0, 0, 1, 0], [], []>} : vector<8x8xbf16>, vector<8x8xbf16>, vector<8x8xf32> -> vector<8x8xf32>
    %44 = arith.addf %43, %39 : vector<8x8xf32>
    %cst_22 = arith.constant dense<0xFF800000> : vector<8xf32>
    %45 = vector.multi_reduction <maximumf>, %44, %cst_22 [1] : vector<8x8xf32> to vector<8xf32>
    %46 = vector.shape_cast %45 : vector<8xf32> to vector<8x1xf32>
    %47 = vector.broadcast %46 : vector<8x1xf32> to vector<8x8xf32>
    %48 = arith.subf %44, %47 : vector<8x8xf32>
    %49 = math.exp %48 : vector<8x8xf32>
    %cst_23 = arith.constant dense<0.000000e+00> : vector<8xf32>
    %50 = vector.multi_reduction <add>, %49, %cst_23 [1] : vector<8x8xf32> to vector<8xf32>
    %51 = vector.shape_cast %50 : vector<8xf32> to vector<8x1xf32>
    %52 = arith.truncf %49 : vector<8x8xf32> to vector<8x8xbf16>
    %cst_24 = arith.constant dense<0.000000e+00> : vector<8x8xf32>
    %53 = tpu.matmul %52, %42, %cst_24 {dimension_numbers = #tpu.dot_dimension_numbers<[1], [0], [0], [1], [0, 0, 1, 1], [], []>} : vector<8x8xbf16>, vector<8x8xbf16>, vector<8x8xf32> -> vector<8x8xf32>
    %cst_25 = arith.constant 1.000000e+00 : f32
    %54 = vector.broadcast %cst_25 : f32 to vector<8x1xf32>
    %55 = arith.divf %54, %51 : vector<8x1xf32>
    %56 = vector.broadcast %55 : vector<8x1xf32> to vector<8x8xf32>
    %57 = arith.mulf %53, %56 : vector<8x8xf32>
    %58 = vector.extract_strided_slice %38 {offsets = [0, 8], sizes = [8, 8], strides = [1, 1]} : vector<16x96xbf16> to vector<8x8xbf16>
    %59 = vector.extract_strided_slice %38 {offsets = [0, 40], sizes = [8, 8], strides = [1, 1]} : vector<16x96xbf16> to vector<8x8xbf16>
    %60 = vector.extract_strided_slice %38 {offsets = [0, 72], sizes = [8, 8], strides = [1, 1]} : vector<16x96xbf16> to vector<8x8xbf16>
    %cst_26 = arith.constant dense<0.000000e+00> : vector<8x8xf32>
    %61 = tpu.matmul %58, %59, %cst_26 {dimension_numbers = #tpu.dot_dimension_numbers<[1], [1], [0], [0], [0, 0, 1, 0], [], []>} : vector<8x8xbf16>, vector<8x8xbf16>, vector<8x8xf32> -> vector<8x8xf32>
    %62 = arith.addf %61, %39 : vector<8x8xf32>
    %cst_27 = arith.constant dense<0xFF800000> : vector<8xf32>
    %63 = vector.multi_reduction <maximumf>, %62, %cst_27 [1] : vector<8x8xf32> to vector<8xf32>
    %64 = vector.shape_cast %63 : vector<8xf32> to vector<8x1xf32>
    %65 = vector.broadcast %64 : vector<8x1xf32> to vector<8x8xf32>
    %66 = arith.subf %62, %65 : vector<8x8xf32>
    %67 = math.exp %66 : vector<8x8xf32>
    %cst_28 = arith.constant dense<0.000000e+00> : vector<8xf32>
    %68 = vector.multi_reduction <add>, %67, %cst_28 [1] : vector<8x8xf32> to vector<8xf32>
    %69 = vector.shape_cast %68 : vector<8xf32> to vector<8x1xf32>
    %70 = arith.truncf %67 : vector<8x8xf32> to vector<8x8xbf16>
    %cst_29 = arith.constant dense<0.000000e+00> : vector<8x8xf32>
    %71 = tpu.matmul %70, %60, %cst_29 {dimension_numbers = #tpu.dot_dimension_numbers<[1], [0], [0], [1], [0, 0, 1, 1], [], []>} : vector<8x8xbf16>, vector<8x8xbf16>, vector<8x8xf32> -> vector<8x8xf32>
    %cst_30 = arith.constant 1.000000e+00 : f32
    %72 = vector.broadcast %cst_30 : f32 to vector<8x1xf32>
    %73 = arith.divf %72, %69 : vector<8x1xf32>
    %74 = vector.broadcast %73 : vector<8x1xf32> to vector<8x8xf32>
    %75 = arith.mulf %71, %74 : vector<8x8xf32>
    %76 = vector.extract_strided_slice %38 {offsets = [0, 16], sizes = [8, 8], strides = [1, 1]} : vector<16x96xbf16> to vector<8x8xbf16>
    %77 = vector.extract_strided_slice %38 {offsets = [0, 48], sizes = [8, 8], strides = [1, 1]} : vector<16x96xbf16> to vector<8x8xbf16>
    %78 = vector.extract_strided_slice %38 {offsets = [0, 80], sizes = [8, 8], strides = [1, 1]} : vector<16x96xbf16> to vector<8x8xbf16>
    %cst_31 = arith.constant dense<0.000000e+00> : vector<8x8xf32>
    %79 = tpu.matmul %76, %77, %cst_31 {dimension_numbers = #tpu.dot_dimension_numbers<[1], [1], [0], [0], [0, 0, 1, 0], [], []>} : vector<8x8xbf16>, vector<8x8xbf16>, vector<8x8xf32> -> vector<8x8xf32>
    %80 = arith.addf %79, %39 : vector<8x8xf32>
    %cst_32 = arith.constant dense<0xFF800000> : vector<8xf32>
    %81 = vector.multi_reduction <maximumf>, %80, %cst_32 [1] : vector<8x8xf32> to vector<8xf32>
    %82 = vector.shape_cast %81 : vector<8xf32> to vector<8x1xf32>
    %83 = vector.broadcast %82 : vector<8x1xf32> to vector<8x8xf32>
    %84 = arith.subf %80, %83 : vector<8x8xf32>
    %85 = math.exp %84 : vector<8x8xf32>
    %cst_33 = arith.constant dense<0.000000e+00> : vector<8xf32>
    %86 = vector.multi_reduction <add>, %85, %cst_33 [1] : vector<8x8xf32> to vector<8xf32>
    %87 = vector.shape_cast %86 : vector<8xf32> to vector<8x1xf32>
    %88 = arith.truncf %85 : vector<8x8xf32> to vector<8x8xbf16>
    %cst_34 = arith.constant dense<0.000000e+00> : vector<8x8xf32>
    %89 = tpu.matmul %88, %78, %cst_34 {dimension_numbers = #tpu.dot_dimension_numbers<[1], [0], [0], [1], [0, 0, 1, 1], [], []>} : vector<8x8xbf16>, vector<8x8xbf16>, vector<8x8xf32> -> vector<8x8xf32>
    %cst_35 = arith.constant 1.000000e+00 : f32
    %90 = vector.broadcast %cst_35 : f32 to vector<8x1xf32>
    %91 = arith.divf %90, %87 : vector<8x1xf32>
    %92 = vector.broadcast %91 : vector<8x1xf32> to vector<8x8xf32>
    %93 = arith.mulf %89, %92 : vector<8x8xf32>
    %94 = vector.extract_strided_slice %38 {offsets = [0, 24], sizes = [8, 8], strides = [1, 1]} : vector<16x96xbf16> to vector<8x8xbf16>
    %95 = vector.extract_strided_slice %38 {offsets = [0, 56], sizes = [8, 8], strides = [1, 1]} : vector<16x96xbf16> to vector<8x8xbf16>
    %96 = vector.extract_strided_slice %38 {offsets = [0, 88], sizes = [8, 8], strides = [1, 1]} : vector<16x96xbf16> to vector<8x8xbf16>
    %cst_36 = arith.constant dense<0.000000e+00> : vector<8x8xf32>
    %97 = tpu.matmul %94, %95, %cst_36 {dimension_numbers = #tpu.dot_dimension_numbers<[1], [1], [0], [0], [0, 0, 1, 0], [], []>} : vector<8x8xbf16>, vector<8x8xbf16>, vector<8x8xf32> -> vector<8x8xf32>
    %98 = arith.addf %97, %39 : vector<8x8xf32>
    %cst_37 = arith.constant dense<0xFF800000> : vector<8xf32>
    %99 = vector.multi_reduction <maximumf>, %98, %cst_37 [1] : vector<8x8xf32> to vector<8xf32>
    %100 = vector.shape_cast %99 : vector<8xf32> to vector<8x1xf32>
    %101 = vector.broadcast %100 : vector<8x1xf32> to vector<8x8xf32>
    %102 = arith.subf %98, %101 : vector<8x8xf32>
    %103 = math.exp %102 : vector<8x8xf32>
    %cst_38 = arith.constant dense<0.000000e+00> : vector<8xf32>
    %104 = vector.multi_reduction <add>, %103, %cst_38 [1] : vector<8x8xf32> to vector<8xf32>
    %105 = vector.shape_cast %104 : vector<8xf32> to vector<8x1xf32>
    %106 = arith.truncf %103 : vector<8x8xf32> to vector<8x8xbf16>
    %cst_39 = arith.constant dense<0.000000e+00> : vector<8x8xf32>
    %107 = tpu.matmul %106, %96, %cst_39 {dimension_numbers = #tpu.dot_dimension_numbers<[1], [0], [0], [1], [0, 0, 1, 1], [], []>} : vector<8x8xbf16>, vector<8x8xbf16>, vector<8x8xf32> -> vector<8x8xf32>
    %cst_40 = arith.constant 1.000000e+00 : f32
    %108 = vector.broadcast %cst_40 : f32 to vector<8x1xf32>
    %109 = arith.divf %108, %105 : vector<8x1xf32>
    %110 = vector.broadcast %109 : vector<8x1xf32> to vector<8x8xf32>
    %111 = arith.mulf %107, %110 : vector<8x8xf32>
    %112 = tpu.concatenate %57, %75, %93, %111 in 1 : vector<8x8xf32>, vector<8x8xf32>, vector<8x8xf32>, vector<8x8xf32> -> vector<8x32xf32>
    %113 = vector.extract_strided_slice %38 {offsets = [8, 0], sizes = [8, 8], strides = [1, 1]} : vector<16x96xbf16> to vector<8x8xbf16>
    %114 = vector.extract_strided_slice %38 {offsets = [8, 32], sizes = [8, 8], strides = [1, 1]} : vector<16x96xbf16> to vector<8x8xbf16>
    %115 = vector.extract_strided_slice %38 {offsets = [8, 64], sizes = [8, 8], strides = [1, 1]} : vector<16x96xbf16> to vector<8x8xbf16>
    %cst_41 = arith.constant dense<0.000000e+00> : vector<8x8xf32>
    %116 = tpu.matmul %113, %114, %cst_41 {dimension_numbers = #tpu.dot_dimension_numbers<[1], [1], [0], [0], [0, 0, 1, 0], [], []>} : vector<8x8xbf16>, vector<8x8xbf16>, vector<8x8xf32> -> vector<8x8xf32>
    %117 = arith.addf %116, %39 : vector<8x8xf32>
    %cst_42 = arith.constant dense<0xFF800000> : vector<8xf32>
    %118 = vector.multi_reduction <maximumf>, %117, %cst_42 [1] : vector<8x8xf32> to vector<8xf32>
    %119 = vector.shape_cast %118 : vector<8xf32> to vector<8x1xf32>
    %120 = vector.broadcast %119 : vector<8x1xf32> to vector<8x8xf32>
    %121 = arith.subf %117, %120 : vector<8x8xf32>
    %122 = math.exp %121 : vector<8x8xf32>
    %cst_43 = arith.constant dense<0.000000e+00> : vector<8xf32>
    %123 = vector.multi_reduction <add>, %122, %cst_43 [1] : vector<8x8xf32> to vector<8xf32>
    %124 = vector.shape_cast %123 : vector<8xf32> to vector<8x1xf32>
    %125 = arith.truncf %122 : vector<8x8xf32> to vector<8x8xbf16>
    %cst_44 = arith.constant dense<0.000000e+00> : vector<8x8xf32>
    %126 = tpu.matmul %125, %115, %cst_44 {dimension_numbers = #tpu.dot_dimension_numbers<[1], [0], [0], [1], [0, 0, 1, 1], [], []>} : vector<8x8xbf16>, vector<8x8xbf16>, vector<8x8xf32> -> vector<8x8xf32>
    %cst_45 = arith.constant 1.000000e+00 : f32
    %127 = vector.broadcast %cst_45 : f32 to vector<8x1xf32>
    %128 = arith.divf %127, %124 : vector<8x1xf32>
    %129 = vector.broadcast %128 : vector<8x1xf32> to vector<8x8xf32>
    %130 = arith.mulf %126, %129 : vector<8x8xf32>
    %131 = vector.extract_strided_slice %38 {offsets = [8, 8], sizes = [8, 8], strides = [1, 1]} : vector<16x96xbf16> to vector<8x8xbf16>
    %132 = vector.extract_strided_slice %38 {offsets = [8, 40], sizes = [8, 8], strides = [1, 1]} : vector<16x96xbf16> to vector<8x8xbf16>
    %133 = vector.extract_strided_slice %38 {offsets = [8, 72], sizes = [8, 8], strides = [1, 1]} : vector<16x96xbf16> to vector<8x8xbf16>
    %cst_46 = arith.constant dense<0.000000e+00> : vector<8x8xf32>
    %134 = tpu.matmul %131, %132, %cst_46 {dimension_numbers = #tpu.dot_dimension_numbers<[1], [1], [0], [0], [0, 0, 1, 0], [], []>} : vector<8x8xbf16>, vector<8x8xbf16>, vector<8x8xf32> -> vector<8x8xf32>
    %135 = arith.addf %134, %39 : vector<8x8xf32>
    %cst_47 = arith.constant dense<0xFF800000> : vector<8xf32>
    %136 = vector.multi_reduction <maximumf>, %135, %cst_47 [1] : vector<8x8xf32> to vector<8xf32>
    %137 = vector.shape_cast %136 : vector<8xf32> to vector<8x1xf32>
    %138 = vector.broadcast %137 : vector<8x1xf32> to vector<8x8xf32>
    %139 = arith.subf %135, %138 : vector<8x8xf32>
    %140 = math.exp %139 : vector<8x8xf32>
    %cst_48 = arith.constant dense<0.000000e+00> : vector<8xf32>
    %141 = vector.multi_reduction <add>, %140, %cst_48 [1] : vector<8x8xf32> to vector<8xf32>
    %142 = vector.shape_cast %141 : vector<8xf32> to vector<8x1xf32>
    %143 = arith.truncf %140 : vector<8x8xf32> to vector<8x8xbf16>
    %cst_49 = arith.constant dense<0.000000e+00> : vector<8x8xf32>
    %144 = tpu.matmul %143, %133, %cst_49 {dimension_numbers = #tpu.dot_dimension_numbers<[1], [0], [0], [1], [0, 0, 1, 1], [], []>} : vector<8x8xbf16>, vector<8x8xbf16>, vector<8x8xf32> -> vector<8x8xf32>
    %cst_50 = arith.constant 1.000000e+00 : f32
    %145 = vector.broadcast %cst_50 : f32 to vector<8x1xf32>
    %146 = arith.divf %145, %142 : vector<8x1xf32>
    %147 = vector.broadcast %146 : vector<8x1xf32> to vector<8x8xf32>
    %148 = arith.mulf %144, %147 : vector<8x8xf32>
    %149 = vector.extract_strided_slice %38 {offsets = [8, 16], sizes = [8, 8], strides = [1, 1]} : vector<16x96xbf16> to vector<8x8xbf16>
    %150 = vector.extract_strided_slice %38 {offsets = [8, 48], sizes = [8, 8], strides = [1, 1]} : vector<16x96xbf16> to vector<8x8xbf16>
    %151 = vector.extract_strided_slice %38 {offsets = [8, 80], sizes = [8, 8], strides = [1, 1]} : vector<16x96xbf16> to vector<8x8xbf16>
    %cst_51 = arith.constant dense<0.000000e+00> : vector<8x8xf32>
    %152 = tpu.matmul %149, %150, %cst_51 {dimension_numbers = #tpu.dot_dimension_numbers<[1], [1], [0], [0], [0, 0, 1, 0], [], []>} : vector<8x8xbf16>, vector<8x8xbf16>, vector<8x8xf32> -> vector<8x8xf32>
    %153 = arith.addf %152, %39 : vector<8x8xf32>
    %cst_52 = arith.constant dense<0xFF800000> : vector<8xf32>
    %154 = vector.multi_reduction <maximumf>, %153, %cst_52 [1] : vector<8x8xf32> to vector<8xf32>
    %155 = vector.shape_cast %154 : vector<8xf32> to vector<8x1xf32>
    %156 = vector.broadcast %155 : vector<8x1xf32> to vector<8x8xf32>
    %157 = arith.subf %153, %156 : vector<8x8xf32>
    %158 = math.exp %157 : vector<8x8xf32>
    %cst_53 = arith.constant dense<0.000000e+00> : vector<8xf32>
    %159 = vector.multi_reduction <add>, %158, %cst_53 [1] : vector<8x8xf32> to vector<8xf32>
    %160 = vector.shape_cast %159 : vector<8xf32> to vector<8x1xf32>
    %161 = arith.truncf %158 : vector<8x8xf32> to vector<8x8xbf16>
    %cst_54 = arith.constant dense<0.000000e+00> : vector<8x8xf32>
    %162 = tpu.matmul %161, %151, %cst_54 {dimension_numbers = #tpu.dot_dimension_numbers<[1], [0], [0], [1], [0, 0, 1, 1], [], []>} : vector<8x8xbf16>, vector<8x8xbf16>, vector<8x8xf32> -> vector<8x8xf32>
    %cst_55 = arith.constant 1.000000e+00 : f32
    %163 = vector.broadcast %cst_55 : f32 to vector<8x1xf32>
    %164 = arith.divf %163, %160 : vector<8x1xf32>
    %165 = vector.broadcast %164 : vector<8x1xf32> to vector<8x8xf32>
    %166 = arith.mulf %162, %165 : vector<8x8xf32>
    %167 = vector.extract_strided_slice %38 {offsets = [8, 24], sizes = [8, 8], strides = [1, 1]} : vector<16x96xbf16> to vector<8x8xbf16>
    %168 = vector.extract_strided_slice %38 {offsets = [8, 56], sizes = [8, 8], strides = [1, 1]} : vector<16x96xbf16> to vector<8x8xbf16>
    %169 = vector.extract_strided_slice %38 {offsets = [8, 88], sizes = [8, 8], strides = [1, 1]} : vector<16x96xbf16> to vector<8x8xbf16>
    %cst_56 = arith.constant dense<0.000000e+00> : vector<8x8xf32>
    %170 = tpu.matmul %167, %168, %cst_56 {dimension_numbers = #tpu.dot_dimension_numbers<[1], [1], [0], [0], [0, 0, 1, 0], [], []>} : vector<8x8xbf16>, vector<8x8xbf16>, vector<8x8xf32> -> vector<8x8xf32>
    %171 = arith.addf %170, %39 : vector<8x8xf32>
    %cst_57 = arith.constant dense<0xFF800000> : vector<8xf32>
    %172 = vector.multi_reduction <maximumf>, %171, %cst_57 [1] : vector<8x8xf32> to vector<8xf32>
    %173 = vector.shape_cast %172 : vector<8xf32> to vector<8x1xf32>
    %174 = vector.broadcast %173 : vector<8x1xf32> to vector<8x8xf32>
    %175 = arith.subf %171, %174 : vector<8x8xf32>
    %176 = math.exp %175 : vector<8x8xf32>
    %cst_58 = arith.constant dense<0.000000e+00> : vector<8xf32>
    %177 = vector.multi_reduction <add>, %176, %cst_58 [1] : vector<8x8xf32> to vector<8xf32>
    %178 = vector.shape_cast %177 : vector<8xf32> to vector<8x1xf32>
    %179 = arith.truncf %176 : vector<8x8xf32> to vector<8x8xbf16>
    %cst_59 = arith.constant dense<0.000000e+00> : vector<8x8xf32>
    %180 = tpu.matmul %179, %169, %cst_59 {dimension_numbers = #tpu.dot_dimension_numbers<[1], [0], [0], [1], [0, 0, 1, 1], [], []>} : vector<8x8xbf16>, vector<8x8xbf16>, vector<8x8xf32> -> vector<8x8xf32>
    %cst_60 = arith.constant 1.000000e+00 : f32
    %181 = vector.broadcast %cst_60 : f32 to vector<8x1xf32>
    %182 = arith.divf %181, %178 : vector<8x1xf32>
    %183 = vector.broadcast %182 : vector<8x1xf32> to vector<8x8xf32>
    %184 = arith.mulf %180, %183 : vector<8x8xf32>
    %185 = tpu.concatenate %130, %148, %166, %184 in 1 : vector<8x8xf32>, vector<8x8xf32>, vector<8x8xf32>, vector<8x8xf32> -> vector<8x32xf32>
    %186 = tpu.concatenate %112, %185 in 0 : vector<8x32xf32>, vector<8x32xf32> -> vector<16x32xf32>
    %187 = arith.truncf %186 : vector<16x32xf32> to vector<16x32xbf16>
    %c0_61 = arith.constant 0 : index
    %c0_62 = arith.constant 0 : index
    %c0_63 = arith.constant 0 : index
    %188 = vector.load %arg8[%c0_61, %c0_62, %c0_63] : memref<1x32x32xbf16, #tpu.memory_space<vmem>>, vector<1x32x32xbf16>
    %189 = vector.shape_cast %188 : vector<1x32x32xbf16> to vector<32x32xbf16>
    %cst_64 = arith.constant dense<0.000000e+00> : vector<16x32xf32>
    %190 = tpu.matmul %187, %189, %cst_64 {dimension_numbers = #tpu.dot_dimension_numbers<[1], [0], [0], [1], [0, 0, 1, 1], [], []>} : vector<16x32xbf16>, vector<32x32xbf16>, vector<16x32xf32> -> vector<16x32xf32>
    %191 = arith.addf %3, %190 : vector<16x32xf32>
    %c0_65 = arith.constant 0 : index
    %c0_66 = arith.constant 0 : index
    %c0_67 = arith.constant 0 : index
    %192 = vector.load %arg9[%c0_65, %c0_66, %c0_67] : memref<1x1x32xf32, #tpu.memory_space<vmem>>, vector<1x1x32xf32>
    %193 = vector.shape_cast %192 : vector<1x1x32xf32> to vector<1x32xf32>
    %194 = vector.broadcast %193 : vector<1x32xf32> to vector<16x32xf32>
    %195 = arith.addf %191, %194 : vector<16x32xf32>
    %c0_68 = arith.constant 0 : index
    %c0_69 = arith.constant 0 : index
    %c0_70 = arith.constant 0 : index
    %196 = vector.load %arg10[%c0_68, %c0_69, %c0_70] : memref<1x1x32xf32, #tpu.memory_space<vmem>>, vector<1x1x32xf32>
    %197 = vector.shape_cast %196 : vector<1x1x32xf32> to vector<1x32xf32>
    %c0_71 = arith.constant 0 : index
    %c0_72 = arith.constant 0 : index
    %c0_73 = arith.constant 0 : index
    %198 = vector.load %arg11[%c0_71, %c0_72, %c0_73] : memref<1x1x32xf32, #tpu.memory_space<vmem>>, vector<1x1x32xf32>
    %199 = vector.shape_cast %198 : vector<1x1x32xf32> to vector<1x32xf32>
    %cst_74 = arith.constant dense<0.000000e+00> : vector<16xf32>
    %200 = vector.multi_reduction <add>, %195, %cst_74 [1] : vector<16x32xf32> to vector<16xf32>
    %201 = vector.shape_cast %200 : vector<16xf32> to vector<16x1xf32>
    %cst_75 = arith.constant 3.200000e+01 : f32
    %202 = vector.broadcast %cst_75 : f32 to vector<16x1xf32>
    %203 = arith.divf %201, %202 : vector<16x1xf32>
    %204 = vector.broadcast %203 : vector<16x1xf32> to vector<16x32xf32>
    %205 = arith.subf %195, %204 : vector<16x32xf32>
    %206 = arith.mulf %205, %205 : vector<16x32xf32>
    %cst_76 = arith.constant dense<0.000000e+00> : vector<16xf32>
    %207 = vector.multi_reduction <add>, %206, %cst_76 [1] : vector<16x32xf32> to vector<16xf32>
    %208 = vector.shape_cast %207 : vector<16xf32> to vector<16x1xf32>
    %cst_77 = arith.constant 3.200000e+01 : f32
    %209 = vector.broadcast %cst_77 : f32 to vector<16x1xf32>
    %210 = arith.divf %208, %209 : vector<16x1xf32>
    %211 = vector.broadcast %203 : vector<16x1xf32> to vector<16x32xf32>
    %212 = arith.subf %195, %211 : vector<16x32xf32>
    %cst_78 = arith.constant 9.99999974E-6 : f32
    %213 = vector.broadcast %cst_78 : f32 to vector<16x1xf32>
    %214 = arith.addf %210, %213 : vector<16x1xf32>
    %215 = math.rsqrt %214 : vector<16x1xf32>
    %216 = vector.broadcast %215 : vector<16x1xf32> to vector<16x32xf32>
    %217 = arith.mulf %212, %216 : vector<16x32xf32>
    %218 = vector.broadcast %197 : vector<1x32xf32> to vector<16x32xf32>
    %219 = arith.mulf %217, %218 : vector<16x32xf32>
    %220 = vector.broadcast %199 : vector<1x32xf32> to vector<16x32xf32>
    %221 = arith.addf %219, %220 : vector<16x32xf32>
    %222 = arith.truncf %221 : vector<16x32xf32> to vector<16x32xbf16>
    %c0_79 = arith.constant 0 : index
    %c0_80 = arith.constant 0 : index
    %c0_81 = arith.constant 0 : index
    %223 = vector.load %arg12[%c0_79, %c0_80, %c0_81] : memref<1x32x128xbf16, #tpu.memory_space<vmem>>, vector<1x32x128xbf16>
    %224 = vector.shape_cast %223 : vector<1x32x128xbf16> to vector<32x128xbf16>
    %cst_82 = arith.constant dense<0.000000e+00> : vector<16x128xf32>
    %225 = tpu.matmul %222, %224, %cst_82 {dimension_numbers = #tpu.dot_dimension_numbers<[1], [0], [0], [1], [0, 0, 1, 1], [], []>} : vector<16x32xbf16>, vector<32x128xbf16>, vector<16x128xf32> -> vector<16x128xf32>
    %c0_83 = arith.constant 0 : index
    %c0_84 = arith.constant 0 : index
    %c0_85 = arith.constant 0 : index
    %226 = vector.load %arg13[%c0_83, %c0_84, %c0_85] : memref<1x1x128xf32, #tpu.memory_space<vmem>>, vector<1x1x128xf32>
    %227 = vector.shape_cast %226 : vector<1x1x128xf32> to vector<1x128xf32>
    %228 = vector.broadcast %227 : vector<1x128xf32> to vector<16x128xf32>
    %229 = arith.addf %225, %228 : vector<16x128xf32>
    %cst_86 = arith.constant 1.702000e+00 : f32
    %230 = vector.broadcast %cst_86 : f32 to vector<16x128xf32>
    %231 = arith.mulf %230, %229 : vector<16x128xf32>
    %232 = arith.negf %231 : vector<16x128xf32>
    %233 = math.exp %232 : vector<16x128xf32>
    %cst_87 = arith.constant 1.000000e+00 : f32
    %234 = vector.broadcast %cst_87 : f32 to vector<16x128xf32>
    %235 = arith.addf %234, %233 : vector<16x128xf32>
    %236 = arith.divf %234, %235 : vector<16x128xf32>
    %237 = arith.mulf %229, %236 : vector<16x128xf32>
    %238 = arith.truncf %237 : vector<16x128xf32> to vector<16x128xbf16>
    %c0_88 = arith.constant 0 : index
    %c0_89 = arith.constant 0 : index
    %c0_90 = arith.constant 0 : index
    %239 = vector.load %arg14[%c0_88, %c0_89, %c0_90] : memref<1x128x32xbf16, #tpu.memory_space<vmem>>, vector<1x128x32xbf16>
    %240 = vector.shape_cast %239 : vector<1x128x32xbf16> to vector<128x32xbf16>
    %cst_91 = arith.constant dense<0.000000e+00> : vector<16x32xf32>
    %241 = tpu.matmul %238, %240, %cst_91 {dimension_numbers = #tpu.dot_dimension_numbers<[1], [0], [0], [1], [0, 0, 1, 1], [], []>} : vector<16x128xbf16>, vector<128x32xbf16>, vector<16x32xf32> -> vector<16x32xf32>
    %c0_92 = arith.constant 0 : index
    %c0_93 = arith.constant 0 : index
    %c0_94 = arith.constant 0 : index
    %242 = vector.load %arg15[%c0_92, %c0_93, %c0_94] : memref<1x1x32xf32, #tpu.memory_space<vmem>>, vector<1x1x32xf32>
    %243 = vector.shape_cast %242 : vector<1x1x32xf32> to vector<1x32xf32>
    %244 = vector.broadcast %243 : vector<1x32xf32> to vector<16x32xf32>
    %245 = arith.addf %241, %244 : vector<16x32xf32>
    %246 = arith.addf %195, %245 : vector<16x32xf32>
    %c0_95 = arith.constant 0 : index
    %c0_96 = arith.constant 0 : index
    %247 = vector.load %arg20[%c0_95, %c0_96] : memref<16x32xf32, #tpu.memory_space<vmem>>, vector<16x32xf32>
    tpu.vector_store %arg20[%c0_95, %c0_96], %246 {strides = array<i32>} : memref<16x32xf32, #tpu.memory_space<vmem>>, vector<16x32xf32>,
    %c1_i32 = arith.constant 1 : i32
    %248 = arith.cmpi eq, %arg1, %c1_i32 : i32
    %249 = arith.extui %248 : i1 to i32
    %c0_i32_97 = arith.constant 0 : i32
    %250 = arith.cmpi ne, %249, %c0_i32_97 : i32
    scf.if %250 {
      %251 = vector.extract_strided_slice %246 {offsets = [5, 0], sizes = [1, 32], strides = [1, 1]} : vector<16x32xf32> to vector<1x32xf32>
      %252 = vector.extract_strided_slice %246 {offsets = [13, 0], sizes = [1, 32], strides = [1, 1]} : vector<16x32xf32> to vector<1x32xf32>
      %253 = tpu.concatenate %251, %252 in 0 : vector<1x32xf32>, vector<1x32xf32> -> vector<2x32xf32>
      %c0_98 = arith.constant 0 : index
      %c0_99 = arith.constant 0 : index
      %254 = vector.load %arg16[%c0_98, %c0_99] : memref<1x32xf32, #tpu.memory_space<vmem>>, vector<1x32xf32>
      %c0_100 = arith.constant 0 : index
      %c0_101 = arith.constant 0 : index
      %255 = vector.load %arg17[%c0_100, %c0_101] : memref<1x32xf32, #tpu.memory_space<vmem>>, vector<1x32xf32>
      %cst_102 = arith.constant dense<0.000000e+00> : vector<2xf32>
      %256 = vector.multi_reduction <add>, %253, %cst_102 [1] : vector<2x32xf32> to vector<2xf32>
      %257 = vector.shape_cast %256 : vector<2xf32> to vector<2x1xf32>
      %cst_103 = arith.constant 3.200000e+01 : f32
      %258 = vector.broadcast %cst_103 : f32 to vector<2x1xf32>
      %259 = arith.divf %257, %258 : vector<2x1xf32>
      %260 = vector.broadcast %259 : vector<2x1xf32> to vector<2x32xf32>
      %261 = arith.subf %253, %260 : vector<2x32xf32>
      %262 = arith.mulf %261, %261 : vector<2x32xf32>
      %cst_104 = arith.constant dense<0.000000e+00> : vector<2xf32>
      %263 = vector.multi_reduction <add>, %262, %cst_104 [1] : vector<2x32xf32> to vector<2xf32>
      %264 = vector.shape_cast %263 : vector<2xf32> to vector<2x1xf32>
      %cst_105 = arith.constant 3.200000e+01 : f32
      %265 = vector.broadcast %cst_105 : f32 to vector<2x1xf32>
      %266 = arith.divf %264, %265 : vector<2x1xf32>
      %267 = vector.broadcast %259 : vector<2x1xf32> to vector<2x32xf32>
      %268 = arith.subf %253, %267 : vector<2x32xf32>
      %cst_106 = arith.constant 9.99999974E-6 : f32
      %269 = vector.broadcast %cst_106 : f32 to vector<2x1xf32>
      %270 = arith.addf %266, %269 : vector<2x1xf32>
      %271 = math.rsqrt %270 : vector<2x1xf32>
      %272 = vector.broadcast %271 : vector<2x1xf32> to vector<2x32xf32>
      %273 = arith.mulf %268, %272 : vector<2x32xf32>
      %274 = vector.broadcast %254 : vector<1x32xf32> to vector<2x32xf32>
      %275 = arith.mulf %273, %274 : vector<2x32xf32>
      %276 = vector.broadcast %255 : vector<1x32xf32> to vector<2x32xf32>
      %277 = arith.addf %275, %276 : vector<2x32xf32>
      %278 = arith.truncf %277 : vector<2x32xf32> to vector<2x32xbf16>
      %c0_107 = arith.constant 0 : index
      %c0_108 = arith.constant 0 : index
      %279 = vector.load %arg18[%c0_107, %c0_108] : memref<32x32xbf16, #tpu.memory_space<vmem>>, vector<32x32xbf16>
      %cst_109 = arith.constant dense<0.000000e+00> : vector<2x32xf32>
      %280 = tpu.matmul %278, %279, %cst_109 {dimension_numbers = #tpu.dot_dimension_numbers<[1], [0], [0], [1], [0, 0, 1, 1], [], []>} : vector<2x32xbf16>, vector<32x32xbf16>, vector<2x32xf32> -> vector<2x32xf32>
      %c0_110 = arith.constant 0 : index
      %c0_111 = arith.constant 0 : index
      %281 = vector.load %arg19[%c0_110, %c0_111] : memref<2x32xf32, #tpu.memory_space<vmem>>, vector<2x32xf32>
      tpu.vector_store %arg19[%c0_110, %c0_111], %280 {strides = array<i32>} : memref<2x32xf32, #tpu.memory_space<vmem>>, vector<2x32xf32>,
    } else {
    }
    return
  }
  func.func @transform_0(%arg0: i32, %arg1: i32) -> (i32, i32) {
    %c0_i32 = arith.constant 0 : i32
    %c0_i32_0 = arith.constant 0 : i32
    return %arg0, %c0_i32 : i32, i32
  }
  func.func @transform_1(%arg0: i32, %arg1: i32) -> (i32, i32) {
    %c0_i32 = arith.constant 0 : i32
    %c0_i32_0 = arith.constant 0 : i32
    %c0_i32_1 = arith.constant 0 : i32
    return %c0_i32, %c0_i32_0 : i32, i32
  }
  func.func @transform_2(%arg0: i32, %arg1: i32) -> (i32, i32, i32) {
    %c0_i32 = arith.constant 0 : i32
    %c0_i32_0 = arith.constant 0 : i32
    %c0_i32_1 = arith.constant 0 : i32
    return %arg1, %c0_i32, %c0_i32_0 : i32, i32, i32
  }
  func.func @transform_3(%arg0: i32, %arg1: i32) -> (i32, i32, i32) {
    %c0_i32 = arith.constant 0 : i32
    %c0_i32_0 = arith.constant 0 : i32
    %c0_i32_1 = arith.constant 0 : i32
    return %arg1, %c0_i32, %c0_i32_0 : i32, i32, i32
  }
  func.func @transform_4(%arg0: i32, %arg1: i32) -> (i32, i32, i32) {
    %c0_i32 = arith.constant 0 : i32
    %c0_i32_0 = arith.constant 0 : i32
    %c0_i32_1 = arith.constant 0 : i32
    return %arg1, %c0_i32, %c0_i32_0 : i32, i32, i32
  }
  func.func @transform_5(%arg0: i32, %arg1: i32) -> (i32, i32, i32) {
    %c0_i32 = arith.constant 0 : i32
    %c0_i32_0 = arith.constant 0 : i32
    %c0_i32_1 = arith.constant 0 : i32
    return %arg1, %c0_i32, %c0_i32_0 : i32, i32, i32
  }
  func.func @transform_6(%arg0: i32, %arg1: i32) -> (i32, i32, i32) {
    %c0_i32 = arith.constant 0 : i32
    %c0_i32_0 = arith.constant 0 : i32
    %c0_i32_1 = arith.constant 0 : i32
    return %arg1, %c0_i32, %c0_i32_0 : i32, i32, i32
  }
  func.func @transform_7(%arg0: i32, %arg1: i32) -> (i32, i32, i32) {
    %c0_i32 = arith.constant 0 : i32
    %c0_i32_0 = arith.constant 0 : i32
    %c0_i32_1 = arith.constant 0 : i32
    return %arg1, %c0_i32, %c0_i32_0 : i32, i32, i32
  }
  func.func @transform_8(%arg0: i32, %arg1: i32) -> (i32, i32, i32) {
    %c0_i32 = arith.constant 0 : i32
    %c0_i32_0 = arith.constant 0 : i32
    %c0_i32_1 = arith.constant 0 : i32
    return %arg1, %c0_i32, %c0_i32_0 : i32, i32, i32
  }
  func.func @transform_9(%arg0: i32, %arg1: i32) -> (i32, i32, i32) {
    %c0_i32 = arith.constant 0 : i32
    %c0_i32_0 = arith.constant 0 : i32
    %c0_i32_1 = arith.constant 0 : i32
    return %arg1, %c0_i32, %c0_i32_0 : i32, i32, i32
  }
  func.func @transform_10(%arg0: i32, %arg1: i32) -> (i32, i32, i32) {
    %c0_i32 = arith.constant 0 : i32
    %c0_i32_0 = arith.constant 0 : i32
    %c0_i32_1 = arith.constant 0 : i32
    return %arg1, %c0_i32, %c0_i32_0 : i32, i32, i32
  }
  func.func @transform_11(%arg0: i32, %arg1: i32) -> (i32, i32, i32) {
    %c0_i32 = arith.constant 0 : i32
    %c0_i32_0 = arith.constant 0 : i32
    %c0_i32_1 = arith.constant 0 : i32
    return %arg1, %c0_i32, %c0_i32_0 : i32, i32, i32
  }
  func.func @transform_12(%arg0: i32, %arg1: i32) -> (i32, i32, i32) {
    %c0_i32 = arith.constant 0 : i32
    %c0_i32_0 = arith.constant 0 : i32
    %c0_i32_1 = arith.constant 0 : i32
    return %arg1, %c0_i32, %c0_i32_0 : i32, i32, i32
  }
  func.func @transform_13(%arg0: i32, %arg1: i32) -> (i32, i32, i32) {
    %c0_i32 = arith.constant 0 : i32
    %c0_i32_0 = arith.constant 0 : i32
    %c0_i32_1 = arith.constant 0 : i32
    return %arg1, %c0_i32, %c0_i32_0 : i32, i32, i32
  }
  func.func @transform_14(%arg0: i32, %arg1: i32) -> (i32, i32) {
    %c0_i32 = arith.constant 0 : i32
    %c0_i32_0 = arith.constant 0 : i32
    %c0_i32_1 = arith.constant 0 : i32
    return %c0_i32, %c0_i32_0 : i32, i32
  }
  func.func @transform_15(%arg0: i32, %arg1: i32) -> (i32, i32) {
    %c0_i32 = arith.constant 0 : i32
    %c0_i32_0 = arith.constant 0 : i32
    %c0_i32_1 = arith.constant 0 : i32
    return %c0_i32, %c0_i32_0 : i32, i32
  }
  func.func @transform_16(%arg0: i32, %arg1: i32) -> (i32, i32) {
    %c0_i32 = arith.constant 0 : i32
    %c0_i32_0 = arith.constant 0 : i32
    %c0_i32_1 = arith.constant 0 : i32
    return %c0_i32, %c0_i32_0 : i32, i32
  }
  func.func @transform_17(%arg0: i32, %arg1: i32) -> (i32, i32) {
    %c0_i32 = arith.constant 0 : i32
    %c0_i32_0 = arith.constant 0 : i32
    return %arg0, %c0_i32 : i32, i32
  }
}

</mosaic_0001>

<bundles_post_ra>
// kernel: text_encoder_forward.1
= control target key start
LH: loop header
LB: loop body
LE: loop exit
PB: predicated region body
PF: predicated region fallthrough
CT: control target
= control target key end

     0   :  { %s3369_s0 = inlined_call_operand.vmem [shape: f32[16,32], index: 0, kind: input, shape index: {}]   ;;  %s3370_s1 = inlined_call_operand.vmem [shape: f32[8,8], index: 1, kind: input, shape index: {}]   ;;  %s3371_s2 = inlined_call_operand.vmem [shape: f32[2,1,32], index: 2, kind: input, shape index: {}]   ;;  %s3372_s3 = inlined_call_operand.vmem [shape: f32[2,1,32], index: 3, kind: input, shape index: {}]   ;;  %s3373_s4 = inlined_call_operand.vmem [shape: bf16[2,32,96], index: 4, kind: input, shape index: {}]   ;;  %s3374_s5 = inlined_call_operand.vmem [shape: f32[2,1,96], index: 5, kind: input, shape index: {}]   ;;  %s3375_s6 = inlined_call_operand.vmem [shape: bf16[2,32,32], index: 6, kind: input, shape index: {}]   ;;  %s3376_s7 = inlined_call_operand.vmem [shape: f32[2,1,32], index: 7, kind: input, shape index: {}]   ;;  %s3377_s8 = inlined_call_operand.vmem [shape: f32[2,1,32], index: 8, kind: input, shape index: {}]   ;;  %s3378_s9 = inlined_call_operand.vmem [shape: f32[2,1,32], index: 9, kind: input, shape index: {}]   ;;  %s3379_s10 = inlined_call_operand.vmem [shape: bf16[2,32,128], index: 10, kind: input, shape index: {}]   ;;  %s3380_s11 = inlined_call_operand.vmem [shape: f32[2,1,128], index: 11, kind: input, shape index: {}]   ;;  %s3381_s12 = inlined_call_operand.vmem [shape: bf16[2,128,32], index: 12, kind: input, shape index: {}]   ;;  %s3382_s13 = inlined_call_operand.vmem [shape: f32[2,1,32], index: 13, kind: input, shape index: {}]   ;;  %s3383_s14 = inlined_call_operand.vmem [shape: f32[1,32], index: 14, kind: input, shape index: {}]   ;;  %s3384_s15 = inlined_call_operand.vmem [shape: f32[1,32], index: 15, kind: input, shape index: {}]   ;;  %s3385_s16 = inlined_call_operand.vmem [shape: bf16[32,32], index: 16, kind: input, shape index: {}]   ;;  %s3386_s17 = inlined_call_operand.hbm [shape: f32[2,32], index: 17, kind: output, shape index: {}]  }
   0x1   :  { %3391 = sst [smem:[#allocation9_spill]] %s3369_s0 }
   0x2   :  { %3392 = sst [smem:[#allocation10_spill]] %s3370_s1 }
   0x3   :  { %3393 = sst [smem:[#allocation11_spill]] %s3373_s4 }
   0x4   :  { %3394 = sst [smem:[#allocation12_spill]] %s3375_s6 }
   0x5   :  { %3395 = sst [smem:[#allocation13_spill]] %s3383_s14 }
   0x6   :  { %3396 = sst [smem:[#allocation14_spill]] %s3384_s15 }
   0x7   :  { %3397 = sst [smem:[#allocation15_spill]] %s3385_s16 }
   0x8   :  { %3398 = sst [smem:[#allocation16_spill]] %s3386_s17 }
   0x9   :  { %22 = vsyncpa [#allocation4], 0  ;;  %s2959_s24 = smov 0   ;;  %s2961_s25 = smov 0  }
   0xa   :  { %s2963_s26 = smov 0  }
   0xb LB: > { %3399 = sst [smem:[#allocation6_spill]] %s2844_s25  ;;  %s37_s28 = sadd.s32 1, %s2844_s25  ;;  %s2848_s26 = sphi %s2963_s26, %s28_s26   ;;  %s2844_s25 = sphi %s2961_s25, %s3419_s25   ;;  %s2840_s24 = sphi %s2959_s24, %s3418_s24  }
   0xc   : > { %3400 = sst [smem:[#allocation7_spill]] %s2848_s26  ;;  %p38_p0 = scmp.ge.s32.totalorder %s37_s28, 2 }
   0xd   : > { %p2400_p1 = scmp.ge.s32.totalorder %s2848_s26, 1  ;;  %p605_p2 = scmp.lt.s32.totalorder %s2848_s26, 3 }
   0xe   : > { %s3421_s28 = smov (%p38_p0, %s37_s28), 0 }
   0xf   : > { %3401 = sst [smem:[#allocation8_spill]] %s3421_s28  ;;  %p606_p3 = pnand %p2400_p1, %p605_p2 }
  0x10   : > { %p702_p4 = scmp.lt.s32.totalorder (!%p606_p3), %s2840_s24, 1  ;;  %s3402_s4 = sld [smem:[#allocation11_spill]] (!%p606_p3) }
  0x11   : > { %609 = sbr.rel (%p606_p3) target bundleno = 2949 (0xb85), region = 88  ;;  %s3403_s6 = sld [smem:[#allocation12_spill]] (!%p606_p3) }
  0x12   : > { %p2409_p5 = scmp.ne.s32.totalorder (!%p606_p3), %s2840_s24, 0 }
  0x16   : > { %s2982_s29 = scalar_select %p702_p4, %s2840_s24, 1 }
  0x17   : > { %s3404_s0 = sld [smem:[#allocation9_spill]] (!%p2409_p5) }
  0x18   : > { %s2463_s21 = sshll.u32 %s2982_s29, 4  ;;  %s726_s14 = scalar_lea.vmem %s3377_s8, %s2982_s29 }
  0x19   : > { %s3000_s28 = scalar_lea.vmem %s3402_s4, %s2463_s21  ;;  %s3005_s26 = scalar_lea.vmem %s3403_s6, %s2463_s21 }
  0x1a   : > { %s729_s27 = scalar_lea.vmem %s3378_s9, %s2982_s29  ;;  %s3022_s4 = scalar_lea.vmem %s3379_s10, %s2463_s21 }
  0x1b   : > { %s737_s6 = scalar_lea.vmem %s3380_s11, %s2982_s29  ;;  %s2466_s16 = sshll.u32 %s2982_s29, 6 }
  0x1c   : > { %s3032_s19 = scalar_lea.vmem %s3381_s12, %s2466_s16  ;;  %s745_s22 = scalar_lea.vmem %s3382_s13, %s2982_s29 }
  0x1d   : > { %750 = sbr.rel (%p2409_p5) target bundleno = 36 (0x24), region = 92 }
  0x22   : > { %v751_v0 = vld [vmem:[%s3404_s0] sm:$0xff]  ;;  %vm753_vm0 = vcmask 261120   ;;  %v752_v1 = vld [vmem:[%s3404_s0 + $0x8] sm:$0xff] }
  0x23   : > { %754 = vst.msk [vmem:[#allocation2] sm:$0xff] %vm753_vm0, %v751_v0  ;;  %755 = vst.msk [vmem:[#allocation2 + $0x8] sm:$0xff] %vm753_vm0, %v752_v1 }
  0x24 PF: > { %vm760_vm1 = vcmask 261120   ;;  %v2732_v16 = vld [vmem:[%s3000_s28 + $0x8] sm:$0xff]   ;;  %v2850_v17 = vmov 0.0   ;;  %vm2851_vm2 = vmmov 0   ;;  %v2733_v18 = vld [vmem:[%s3000_s28] sm:$0xff]   ;;  %s3405_s25 = scalar_lea.vmem %s3371_s2, %s2982_s29  ;;  %s3406_s20 = scalar_lea.vmem %s3372_s3, %s2982_s29  ;;  %vm877_vm3 = vcmask 64512  }
  0x25   : > { %2520 = vmatprep.subr.bf16.mxu0 %v2850_v17  ;;  %2524 = vmatprep.mubr.msk.bf16.mxu0 %vm2851_vm2, %v2850_v17  ;;  %v2410_v27 = vld [vmem:[%s3405_s25] ss:$0 sm:$0xff]  ;;  %s3407_s21 = scalar_lea.vmem %s3374_s5, %s2982_s29  ;;  %s2852_s30 = smov 88   ;;  %vm939_vm4 = vcmask 1043456   ;;  %vm1332_vm5 = vcmask 130048   ;;  %vm1334_vm6 = vcmask 195584  }
  0x26   : > { %2521 = vmatpush3.bf16.msra.mxu0 %v2732_v16  ;;  %2540 = vmatprep.subr.bf16.mxu1 %v2850_v17  ;;  %v2411_v31 = vld [vmem:[%s3406_s20] ss:$0 sm:$0xff]  ;;  %s2853_s17 = smov 96   ;;  %s2854_s16 = smov 120  }
  0x27   : > { %2522 = vmatprep.subr.bf16.mxu0 %v2850_v17  ;;  %2542 = vmatprep.mubr.msk.bf16.mxu1 %vm2851_vm2, %v2850_v17  ;;  %v2412_v37 = vld [vmem:[%s3407_s21] ss:$0 sm:$0xff]  ;;  %s2855_s28 = smov 112   ;;  %s2856_s25 = smov 80  }
  0x28   : > { %s2857_s15 = smov 104   ;;  %s2858_s18 = smov 72  }
  0x29   : > { %s2859_s20 = smov 64   ;;  %s2860_s1 = smov 48  }
  0x2a   : > { %v3045_v2 = vld [vmem:[#allocation2] sm:$0xff]  ;;  %v3047_v3 = vld [vmem:[#allocation2 + $0x8] sm:$0xff]  ;;  %2523 = vmatpush3.bf16.msra.mxu0 %v2733_v18  ;;  %s2861_s23 = smov 56   ;;  %p2453_p6 = scmp.ne.s32.totalorder %s2840_s24, 1 }
  0x2b   : > { %v761_v4 = vsel %vm760_vm1, %v3045_v2, 0.0  ;;  %v764_v5 = vsel %vm760_vm1, %v3047_v3, 0.0  ;;  %2528 = vmatprep.subr.bf16.mxu0 %v2850_v17 }
  0x2c   : > { %762 = vadd.xlane.f32.xlu0 %v761_v4 }
  0x30   : > { %765 = vadd.xlane.f32.xlu0 %v764_v5 }
  0xb5   : > { %v763_v6 = vpop.xlane.xlu0 %762 }
  0xb6   : > { %v768_v7 = vmul.f32 0.03125, %v763_v6 }
  0xb8   : > { %v770_v8 = vsub.f32 %v3045_v2, %v768_v7 }
  0xb9   : > { %v766_v9 = vpop.xlane.xlu0 %765 }
  0xba   : > { %v769_v10 = vmul.f32 0.03125, %v766_v9  ;;  %v772_v11 = vmul.f32 %v770_v8, %v770_v8 }
  0xbc   : > { %v771_v12 = vsub.f32 %v3047_v3, %v769_v10  ;;  %v774_v13 = vsel %vm760_vm1, %v772_v11, 0.0 }
  0xbd   : > { %775 = vadd.xlane.f32.xlu1 %v774_v13 }
  0xbe   : > { %v773_v14 = vmul.f32 %v771_v12, %v771_v12 }
  0xc0   : > { %v777_v15 = vsel %vm760_vm1, %v773_v14, 0.0 }
  0xc1   : > { %778 = vadd.xlane.f32.xlu1 %v777_v15 }
 0x146   : > { %v776_v19 = vpop.xlane.xlu1 %775 }
 0x147   : > { %v780_v20 = vmul.f32 0.03125, %v776_v19 }
 0x149   : > { %v782_v21 = vadd.f32 1e-05, %v780_v20 }
 0x14a   : > { %v779_v22 = vpop.xlane.xlu1 %778 }
 0x14b   : > { %2746 = vrsqrt.f32 %v782_v21  ;;  %v781_v23 = vmul.f32 0.03125, %v779_v22 }
 0x14d   : > { %v783_v24 = vadd.f32 1e-05, %v781_v23 }
 0x14f   : > { %2748 = vrsqrt.f32 %v783_v24 }
 0x158   : > { %v2747_v25 = vpop.eup %2746 }
 0x159   : > { %v786_v26 = vmul.f32 %v2747_v25, %v770_v8 }
 0x15b   : > { %v794_v30 = vmul.f32 %v2410_v27, %v786_v26 }
 0x15c   : > { %v2749_v28 = vpop.eup %2748 }
 0x15d   : > { %v787_v29 = vmul.f32 %v2749_v28, %v771_v12  ;;  %v802_v33 = vadd.f32 %v2411_v31, %v794_v30 }
 0x15f   : > { %v795_v32 = vmul.f32 %v2410_v27, %v787_v29 }
 0x161   : > { %v803_v34 = vadd.f32 %v2411_v31, %v795_v32 }
 0x163   : > { %v804_v35 = vpack.c.bf16 %v803_v34, %v802_v33 }
 0x165   : > { %2525 = vmatmul.mubr.msk.bf16.vlgmr.msra.gmra.mxu0 %vm760_vm1, %v804_v35 }
 0x166   : > { %2530 = vmatprep.mubr.msk.bf16.mxu0 %vm2851_vm2, %v2850_v17 }
 0x225   : > { %v865_v36 = vpop.f32.mrf.mxu0 }
 0x226   : > { %v866_v40 = vadd.f32 %v2412_v37, %v865_v36 }
 0x227   : > { %v2526_v38 = vpop.f32.mrf.mxu0 }
 0x229   : > { %v868_v39 = vpop.f32.mrf.mxu0 }
 0x22a   : > { %v869_v41 = vadd.f32 %v2412_v37, %v868_v39 }
 0x22b   : > { %v2527_v42 = vpop.f32.mrf.mxu0 }
 0x22c   : > { %v3085_v43 = vpack.c.bf16 %v869_v41, %v866_v40 }
 0x22e   : > { %988 = vrot.lane.b32.xlu1 %v3085_v43, %s2852_s30  ;;  %875 = vrot.lane.b32.xlu0 %v3085_v43, %s2853_s17  ;;  %v3094_v44 = vrot.slane %v3085_v43, 4 }
 0x232   : > { %986 = vrot.lane.b32.xlu1 %v3085_v43, %s2854_s16  ;;  %1097 = vrot.lane.b32.xlu0 %v3085_v43, %s2855_s28 }
 0x236   : > { %1099 = vrot.lane.b32.xlu1 %v3085_v43, %s2856_s25  ;;  %1208 = vrot.lane.b32.xlu0 %v3085_v43, %s2857_s15 }
 0x23a   : > { %1210 = vrot.lane.b32.xlu1 %v3085_v43, %s2858_s18  ;;  %1448 = vrot.lane.b32.xlu0 %v3094_v44, %s2852_s30  ;;  %s3410_s30 = sld [smem:[#allocation15_spill]] (!%p2453_p6) }
 0x23e   : > { %1559 = vrot.lane.b32.xlu0 %v3094_v44, %s2856_s25  ;;  %1337 = vrot.lane.b32.xlu1 %v3094_v44, %s2853_s17  ;;  %s3408_s17 = sld [smem:[#allocation10_spill]]  ;;  %s2864_s25 = smov 16  }
 0x242   : > { %1670 = vrot.lane.b32.xlu0 %v3094_v44, %s2858_s18  ;;  %1446 = vrot.lane.b32.xlu1 %v3094_v44, %s2854_s16  ;;  %s2862_s16 = smov 40   ;;  %s3412_s18 = sld [smem:[#allocation14_spill]] (!%p2453_p6) }
 0x244   : > { %v873_v7 = vld [vmem:[%s3408_s17] sm:$0xff] }
 0x246   : > { %934 = vrot.lane.b32.xlu0 %v3085_v43, %s2859_s20  ;;  %1557 = vrot.lane.b32.xlu1 %v3094_v44, %s2855_s28  ;;  %s2863_s28 = smov 8  }
 0x24a   : > { %1157 = vrot.lane.b32.xlu0 %v3085_v43, %s2860_s1  ;;  %1668 = vrot.lane.b32.xlu1 %v3094_v44, %s2857_s15  ;;  %s2865_s15 = smov 24  }
 0x24e   : > { %1046 = vrot.lane.b32.xlu1 %v3085_v43, %s2861_s23 }
 0x2a0   : > { %v989_v45 = vpop.permute.xlu1 %988  ;;  %v876_v46 = vpop.permute.xlu0 %875 }
 0x2a1   : > { %v882_v47 = vsel %vm877_vm3, %v876_v46, 0  ;;  %v994_v48 = vsel %vm877_vm3, %v989_v45, 0 }
 0x2a2   : > { %2529 = vmatpush3.bf16.xpose.msra.mxu0 %v882_v47  ;;  %2541 = vmatpush3.bf16.xpose.msra.mxu1 %v994_v48 }
 0x2a3   : > { %2552 = vmatprep.subr.bf16.mxu1 %v2850_v17  ;;  %2534 = vmatprep.subr.bf16.mxu0 %v2850_v17 }
 0x2a4   : > { %v987_v49 = vpop.permute.xlu1 %986  ;;  %v1098_v50 = vpop.permute.xlu0 %1097 }
 0x2a8   : > { %v1100_v51 = vpop.permute.xlu1 %1099  ;;  %v1209_v52 = vpop.permute.xlu0 %1208 }
 0x2a9   : > { %v1105_v53 = vsel %vm877_vm3, %v1100_v51, 0  ;;  %2531 = vmatmul.mubr.msk.bf16.vlgmr.msra.gmra.mxu0 %vm877_vm3, %v3085_v43  ;;  %2543 = vmatmul.mubr.msk.bf16.vlgmr.msra.gmra.mxu1 %vm877_vm3, %v987_v49 }
 0x2aa   : > { %2553 = vmatpush3.bf16.xpose.msra.mxu1 %v1105_v53  ;;  %2554 = vmatprep.mubr.msk.bf16.mxu1 %vm2851_vm2, %v2850_v17 }
 0x2ab   : > { %2564 = vmatprep.subr.bf16.mxu1 %v2850_v17  ;;  %2536 = vmatprep.mubr.msk.bf16.mxu0 %vm2851_vm2, %v2850_v17 }
 0x2ac   : > { %v1449_v54 = vpop.permute.xlu0 %1448  ;;  %v1211_v55 = vpop.permute.xlu1 %1210 }
 0x2ad   : > { %v1216_v57 = vsel %vm877_vm3, %v1211_v55, 0  ;;  %v1454_v63 = vsel %vm877_vm3, %v1449_v54, 0 }
 0x2b0   : > { %v1560_v56 = vpop.permute.xlu0 %1559  ;;  %v1338_v59 = vpop.permute.xlu1 %1337 }
 0x2b1   : > { %2555 = vmatmul.mubr.msk.bf16.vlgmr.msra.gmra.mxu1 %vm877_vm3, %v1098_v50  ;;  %v1343_v61 = vsel %vm877_vm3, %v1338_v59, 0  ;;  %v1565_v1 = vsel %vm877_vm3, %v1560_v56, 0 }
 0x2b2   : > { %2565 = vmatpush3.bf16.xpose.msra.mxu1 %v1216_v57  ;;  %2566 = vmatprep.mubr.msk.bf16.mxu1 %vm2851_vm2, %v2850_v17 }
 0x2b3   : > { %2576 = vmatprep.subr.bf16.mxu1 %v2850_v17 }
 0x2b4   : > { %v1671_v58 = vpop.permute.xlu0 %1670  ;;  %v1447_v0 = vpop.permute.xlu1 %1446 }
 0x2b5   : > { %v1676_v5 = vsel %vm877_vm3, %v1671_v58, 0 }
 0x2b8   : > { %v935_v60 = vpop.permute.xlu0 %934  ;;  %v1558_v4 = vpop.permute.xlu1 %1557 }
 0x2b9   : > { %v941_v62 = vsel %vm939_vm4, %v935_v60, 0  ;;  %2567 = vmatmul.mubr.msk.bf16.vlgmr.msra.gmra.mxu1 %vm877_vm3, %v1209_v52 }
 0x2ba   : > { %2535 = vmatpush3.bf16.msra.mxu0 %v941_v62  ;;  %2577 = vmatpush3.bf16.xpose.msra.mxu1 %v1343_v61 }
 0x2bb   : > { %2578 = vmatprep.mubr.msk.bf16.mxu1 %vm2851_vm2, %v2850_v17  ;;  %2588 = vmatprep.subr.bf16.mxu1 %v2850_v17 }
 0x2bc   : > { %2546 = vmatprep.subr.bf16.mxu0 %v2850_v17  ;;  %v1669_v6 = vpop.permute.xlu1 %1668  ;;  %v1158_v58 = vpop.permute.xlu0 %1157 }
 0x2c0   : > { %v1047_v59 = vpop.permute.xlu1 %1046 }
 0x2c1   : > { %2579 = vmatmul.mubr.msk.bf16.vlgmr.msra.gmra.mxu1 %vm877_vm3, %v3094_v44 }
 0x2c2   : > { %2589 = vmatpush3.bf16.xpose.msra.mxu1 %v1454_v63  ;;  %2590 = vmatprep.mubr.msk.bf16.mxu1 %vm2851_vm2, %v2850_v17 }
 0x2c3   : > { %2600 = vmatprep.subr.bf16.mxu1 %v2850_v17 }
 0x2c9   : > { %2591 = vmatmul.mubr.msk.bf16.vlgmr.msra.gmra.mxu1 %vm877_vm3, %v1447_v0 }
 0x2ca   : > { %2601 = vmatpush3.bf16.xpose.msra.mxu1 %v1565_v1  ;;  %2602 = vmatprep.mubr.msk.bf16.mxu1 %vm2851_vm2, %v2850_v17 }
 0x2cb   : > { %2612 = vmatprep.subr.bf16.mxu1 %v2850_v17 }
 0x2d1   : > { %2603 = vmatmul.mubr.msk.bf16.vlgmr.msra.gmra.mxu1 %vm877_vm3, %v1558_v4 }
 0x2d2   : > { %2613 = vmatpush3.bf16.xpose.msra.mxu1 %v1676_v5  ;;  %2614 = vmatprep.mubr.msk.bf16.mxu1 %vm2851_vm2, %v2850_v17 }
 0x2d3   : > { %2624 = vmatprep.subr.bf16.mxu1 %v2850_v17 }
 0x2d9   : > { %2615 = vmatmul.mubr.msk.bf16.vlgmr.msra.gmra.mxu1 %vm877_vm3, %v1669_v6 }
 0x2da   : > { %2628 = vmatprep.mubr.msk.bf16.mxu1 %vm2851_vm2, %v2850_v17 }
 0x369   : > { %v918_v8 = vpop.f32.mrf.mxu0  ;;  %v1030_v9 = vpop.f32.mrf.mxu1 }
 0x36a   : > { %v3157_v10 = vadd.f32 %v918_v8, %v873_v7  ;;  %v3159_v11 = vadd.f32 %v1030_v9, %v873_v7 }
 0x36b   : > { %v2532_v12 = vpop.f32.mrf.mxu0  ;;  %v2544_v13 = vpop.f32.mrf.mxu1 }
 0x36c   : > { %v1036_v14 = vsel %vm877_vm3, %v3159_v11, -inf  ;;  %v924_v15 = vsel %vm877_vm3, %v3157_v10, -inf }
 0x36d   : > { %v1033_v16 = vpop.f32.mrf.mxu1  ;;  %1037 = vmax.xlane.f32.xlu1 %v1036_v14  ;;  %925 = vmax.xlane.f32.xlu0 %v924_v15  ;;  %v921_v18 = vpop.f32.mrf.mxu0 }
 0x36e   : > { %v1163_v18 = vsel %vm939_vm4, %v1158_v58, 0 }
 0x36f   : > { %v2533_v19 = vpop.f32.mrf.mxu0  ;;  %v2545_v20 = vpop.f32.mrf.mxu1 }
 0x371   : > { %v1141_v21 = vpop.f32.mrf.mxu1 }
 0x372   : > { %v1142_v22 = vadd.f32 %v1141_v21, %v873_v7 }
 0x373   : > { %v2556_v23 = vpop.f32.mrf.mxu1 }
 0x374   : > { %v1147_v24 = vsel %vm877_vm3, %v1142_v22, -inf }
 0x375   : > { %v1144_v25 = vpop.f32.mrf.mxu1  ;;  %1148 = vmax.xlane.f32.xlu0 %v1147_v24 }
 0x377   : > { %v2557_v26 = vpop.f32.mrf.mxu1 }
 0x379   : > { %v1252_v27 = vpop.f32.mrf.mxu1 }
 0x37a   : > { %v3166_v28 = vadd.f32 %v1252_v27, %v873_v7 }
 0x37b   : > { %v2568_v29 = vpop.f32.mrf.mxu1 }
 0x37c   : > { %v1258_v30 = vsel %vm877_vm3, %v3166_v28, -inf }
 0x37d   : > { %v1255_v31 = vpop.f32.mrf.mxu1  ;;  %1259 = vmax.xlane.f32.xlu0 %v1258_v30 }
 0x37e   : > { %1395 = vrot.lane.b32.xlu1 %v3094_v44, %s2859_s20  ;;  %s3409_s20 = scalar_lea.vmem %s3376_s7, %s2982_s29 }
 0x37f   : > { %v2569_v32 = vpop.f32.mrf.mxu1 }
 0x381   : > { %v1379_v33 = vpop.f32.mrf.mxu1 }
 0x382   : > { %v3173_v49 = vadd.f32 %v1379_v33, %v873_v7 }
 0x383   : > { %v2580_v34 = vpop.f32.mrf.mxu1 }
 0x384   : > { %v1385_v53 = vsel %vm877_vm3, %v3173_v49, -inf }
 0x385   : > { %v1382_v35 = vpop.f32.mrf.mxu1 }
 0x387   : > { %v2581_v36 = vpop.f32.mrf.mxu1 }
 0x389   : > { %v1490_v37 = vpop.f32.mrf.mxu1 }
 0x38a   : > { %v3175_v52 = vadd.f32 %v1490_v37, %v873_v7 }
 0x38b   : > { %v2592_v38 = vpop.f32.mrf.mxu1 }
 0x38c   : > { %v1496_v54 = vsel %vm877_vm3, %v3175_v52, -inf }
 0x38d   : > { %v1493_v39 = vpop.f32.mrf.mxu1 }
 0x38f   : > { %v2593_v40 = vpop.f32.mrf.mxu1 }
 0x391   : > { %v1601_v41 = vpop.f32.mrf.mxu1 }
 0x392   : > { %v3181_v55 = vadd.f32 %v1601_v41, %v873_v7 }
 0x393   : > { %v2604_v42 = vpop.f32.mrf.mxu1  ;;  %1268 = vrot.lane.b32.xlu0 %v3085_v43, %s2862_s16 }
 0x394   : > { %v1607_v43 = vsel %vm877_vm3, %v3181_v55, -inf }
 0x395   : > { %v1604_v45 = vpop.f32.mrf.mxu1 }
 0x397   : > { %v2605_v46 = vpop.f32.mrf.mxu1 }
 0x399   : > { %v1712_v47 = vpop.f32.mrf.mxu1 }
 0x39a   : > { %v3189_v56 = vadd.f32 %v1712_v47, %v873_v7 }
 0x39b   : > { %v2616_v48 = vpop.f32.mrf.mxu1 }
 0x39c   : > { %v1718_v57 = vsel %vm877_vm3, %v3189_v56, -inf }
 0x39d   : > { %v1715_v50 = vpop.f32.mrf.mxu1 }
 0x39f   : > { %v2617_v51 = vpop.f32.mrf.mxu1 }
 0x3a2   : > { %1386 = vmax.xlane.f32.xlu1 %v1385_v53 }
 0x3a6   : > { %1497 = vmax.xlane.f32.xlu1 %v1496_v54 }
 0x3b2   : > { %1608 = vmax.xlane.f32.xlu0 %v1607_v43 }
 0x3b7   : > { %1506 = vrot.lane.b32.xlu1 %v3094_v44, %s2861_s23 }
 0x3c8   : > { %1617 = vrot.lane.b32.xlu0 %v3094_v44, %s2860_s1 }
 0x3db   : > { %1719 = vmax.xlane.f32.xlu1 %v1718_v57 }
 0x3ec   : > { %1728 = vrot.lane.b32.xlu1 %v3094_v44, %s2862_s16 }
 0x3f6   : > { %v1038_v60 = vpop.xlane.xlu1 %1037  ;;  %v926_v61 = vpop.xlane.xlu0 %925 }
 0x3f7   : > { %v1039_v62 = vsub.f32 %v3159_v11, %v1038_v60  ;;  %v927_v63 = vsub.f32 %v3157_v10, %v926_v61  ;;  %v1052_v11 = vsel %vm939_vm4, %v1047_v59, 0 }
 0x3f9   : > { %v1040_v0 = vmul.f32 1.442695, %v1039_v62  ;;  %v928_v1 = vmul.f32 1.442695, %v927_v63 }
 0x3fa   : > { %v1396_v23 = vpop.permute.xlu1 %1395 }
 0x3fb   : > { %2750 = vpow2.f32 %v1040_v0  ;;  %v1401_v25 = vsel %vm939_vm4, %v1396_v23, 0 }
 0x3fc   : > { %2752 = vpow2.f32 %v928_v1 }
 0x3fe   : > { %v1149_v4 = vpop.xlane.xlu0 %1148 }
 0x3ff   : > { %v1150_v5 = vsub.f32 %v1142_v22, %v1149_v4 }
 0x401   : > { %v1151_v6 = vmul.f32 1.442695, %v1150_v5 }
 0x403   : > { %2754 = vpow2.f32 %v1151_v6 }
 0x406   : > { %v1260_v7 = vpop.xlane.xlu0 %1259 }
 0x407   : > { %v1261_v12 = vsub.f32 %v3166_v28, %v1260_v7 }
 0x408   : > { %v2751_v8 = vpop.eup %2750 }
 0x409   : > { %v3196_v9 = vpop.eup %2752  ;;  %v1042_v44 = vsel %vm877_vm3, %v2751_v8, 0.0  ;;  %v1262_v13 = vmul.f32 1.442695, %v1261_v12  ;;  %v1045_v16 = vpack.c.bf16 %v2751_v8, %v2751_v8 }
 0x40a   : > { %1043 = vadd.xlane.f32.xlu0 %v1042_v44  ;;  %v933_v10 = vpack.c.bf16 %v3196_v9, %v3196_v9  ;;  %v1269_v19 = vpop.permute.xlu0 %1268  ;;  %v930_v50 = vsel %vm877_vm3, %v3196_v9, 0.0 }
 0x40b   : > { %2756 = vpow2.f32 %v1262_v13  ;;  %v1274_v21 = vsel %vm939_vm4, %v1269_v19, 0 }
 0x40c   : > { %2537 = vmatmul.mubr.msk.bf16.vlgmr.msra.gmra.mxu0 %vm877_vm3, %v933_v10 }
 0x40d   : > { %2547 = vmatpush3.bf16.msra.mxu0 %v1052_v11  ;;  %2548 = vmatprep.mubr.msk.bf16.mxu0 %vm2851_vm2, %v2850_v17 }
 0x40e   : > { %2558 = vmatprep.subr.bf16.mxu0 %v2850_v17 }
 0x410   : > { %v2755_v14 = vpop.eup %2754 }
 0x411   : > { %v1153_v15 = vsel %vm877_vm3, %v2755_v14, 0.0  ;;  %v1156_v20 = vpack.c.bf16 %v2755_v14, %v2755_v14 }
 0x412   : > { %1154 = vadd.xlane.f32.xlu0 %v1153_v15 }
 0x414   : > { %2549 = vmatmul.mubr.msk.bf16.vlgmr.msra.gmra.mxu0 %vm877_vm3, %v1045_v16 }
 0x415   : > { %2559 = vmatpush3.bf16.msra.mxu0 %v1163_v18  ;;  %2560 = vmatprep.mubr.msk.bf16.mxu0 %vm2851_vm2, %v2850_v17 }
 0x416   : > { %2570 = vmatprep.subr.bf16.mxu0 %v2850_v17 }
 0x418   : > { %v2757_v22 = vpop.eup %2756 }
 0x419   : > { %v1267_v24 = vpack.c.bf16 %v2757_v22, %v2757_v22 }
 0x41c   : > { %2561 = vmatmul.mubr.msk.bf16.vlgmr.msra.gmra.mxu0 %vm877_vm3, %v1156_v20 }
 0x41d   : > { %2571 = vmatpush3.bf16.msra.mxu0 %v1274_v21  ;;  %2572 = vmatprep.mubr.msk.bf16.mxu0 %vm2851_vm2, %v2850_v17 }
 0x41e   : > { %2582 = vmatprep.subr.bf16.mxu0 %v2850_v17 }
 0x424   : > { %2573 = vmatmul.mubr.msk.bf16.vlgmr.msra.gmra.mxu0 %vm877_vm3, %v1267_v24 }
 0x425   : > { %2583 = vmatpush3.bf16.msra.mxu0 %v1401_v25  ;;  %2584 = vmatprep.mubr.msk.bf16.mxu0 %vm2851_vm2, %v2850_v17 }
 0x426   : > { %2594 = vmatprep.subr.bf16.mxu0 %v2850_v17 }
 0x42b   : > { %v1387_v26 = vpop.xlane.xlu1 %1386 }
 0x42c   : > { %v1388_v27 = vsub.f32 %v3173_v49, %v1387_v26  ;;  %v1264_v49 = vsel %vm877_vm3, %v2757_v22, 0.0 }
 0x42e   : > { %v1389_v28 = vmul.f32 1.442695, %v1388_v27  ;;  %v2734_v27 = vld [vmem:[%s3005_s26 + $0x8] sm:$0xff]  }
 0x42f   : > { %v1498_v29 = vpop.xlane.xlu1 %1497  ;;  %2625 = vmatpush3.bf16.msra.mxu1 %v2734_v27 }
 0x430   : > { %2758 = vpow2.f32 %v1389_v28  ;;  %v1499_v30 = vsub.f32 %v3175_v52, %v1498_v29  ;;  %2626 = vmatprep.subr.bf16.mxu1 %v2850_v17 }
 0x432   : > { %v1500_v31 = vmul.f32 1.442695, %v1499_v30 }
 0x433   : > { %v1507_v35 = vpop.permute.xlu1 %1506 }
 0x434   : > { %2760 = vpow2.f32 %v1500_v31  ;;  %v1512_v38 = vsel %vm939_vm4, %v1507_v35, 0 }
 0x43b   : > { %v1609_v32 = vpop.xlane.xlu0 %1608 }
 0x43c   : > { %v1610_v33 = vsub.f32 %v3181_v55, %v1609_v32 }
 0x43d   : > { %v2759_v34 = vpop.eup %2758 }
 0x43e   : > { %v1611_v36 = vmul.f32 1.442695, %v1610_v33  ;;  %v1394_v37 = vpack.c.bf16 %v2759_v34, %v2759_v34 }
 0x43f   : > { %v1618_v41 = vpop.permute.xlu0 %1617 }
 0x440   : > { %2762 = vpow2.f32 %v1611_v36  ;;  %2585 = vmatmul.mubr.msk.bf16.vlgmr.msra.gmra.mxu0 %vm877_vm3, %v1394_v37  ;;  %v1623_v45 = vsel %vm939_vm4, %v1618_v41, 0 }
 0x441   : > { %v2761_v39 = vpop.eup %2760  ;;  %2595 = vmatpush3.bf16.msra.mxu0 %v1512_v38  ;;  %2596 = vmatprep.mubr.msk.bf16.mxu0 %vm2851_vm2, %v2850_v17 }
 0x442   : > { %v1502_v40 = vsel %vm877_vm3, %v2761_v39, 0.0  ;;  %2606 = vmatprep.subr.bf16.mxu0 %v2850_v17  ;;  %v1505_v42 = vpack.c.bf16 %v2761_v39, %v2761_v39 }
 0x443   : > { %1503 = vadd.xlane.f32.xlu1 %v1502_v40 }
 0x448   : > { %2597 = vmatmul.mubr.msk.bf16.vlgmr.msra.gmra.mxu0 %vm877_vm3, %v1505_v42  ;;  %v2735_v42 = vld [vmem:[%s3005_s26] sm:$0xff]  }
 0x449   : > { %2607 = vmatpush3.bf16.msra.mxu0 %v1623_v45  ;;  %2608 = vmatprep.mubr.msk.bf16.mxu0 %vm2851_vm2, %v2850_v17 }
 0x44a   : > { %2618 = vmatprep.subr.bf16.mxu0 %v2850_v17  ;;  %2627 = vmatpush3.bf16.msra.mxu1 %v2735_v42  ;;  %v2436_v42 = vld [vmem:[%s726_s14] ss:$0 sm:$0xff] }
 0x44b   : > { %2640 = vmatprep.subr.bf16.mxu1 %v2850_v17 }
 0x44d   : > { %v2763_v46 = vpop.eup %2762 }
 0x44e   : > { %v1613_v47 = vsel %vm877_vm3, %v2763_v46, 0.0  ;;  %v1616_v48 = vpack.c.bf16 %v2763_v46, %v2763_v46 }
 0x44f   : > { %1614 = vadd.xlane.f32.xlu0 %v1613_v47 }
 0x450   : > { %2609 = vmatmul.mubr.msk.bf16.vlgmr.msra.gmra.mxu0 %vm877_vm3, %v1616_v48 }
 0x451   : > { %2620 = vmatprep.mubr.msk.bf16.mxu0 %vm2851_vm2, %v2850_v17 }
 0x453   : > { %1265 = vadd.xlane.f32.xlu0 %v1264_v49 }
 0x457   : > { %931 = vadd.xlane.f32.xlu0 %v930_v50 }
 0x464   : > { %v1720_v51 = vpop.xlane.xlu1 %1719 }
 0x465   : > { %v1721_v52 = vsub.f32 %v3189_v56, %v1720_v51  ;;  %v1391_v56 = vsel %vm877_vm3, %v2759_v34, 0.0 }
 0x467   : > { %v1722_v53 = vmul.f32 1.442695, %v1721_v52 }
 0x468   : > { %v1729_v54 = vpop.permute.xlu1 %1728 }
 0x469   : > { %2764 = vpow2.f32 %v1722_v53  ;;  %v1734_v55 = vsel %vm939_vm4, %v1729_v54, 0 }
 0x46a   : > { %2619 = vmatpush3.bf16.msra.mxu0 %v1734_v55 }
 0x46b   : > { %2632 = vmatprep.subr.bf16.mxu0 %v2850_v17 }
 0x476   : > { %v2765_v43 = vpop.eup %2764 }
 0x477   : > { %v1724_v57 = vsel %vm877_vm3, %v2765_v43, 0.0  ;;  %v1727_v58 = vpack.c.bf16 %v2765_v43, %v2765_v43 }
 0x478   : > { %1725 = vadd.xlane.f32.xlu1 %v1724_v57 }
 0x479   : > { %2621 = vmatmul.mubr.msk.bf16.vlgmr.msra.gmra.mxu0 %vm877_vm3, %v1727_v58 }
 0x47a   : > { %2636 = vmatprep.mubr.msk.bf16.mxu0 %vm2851_vm2, %v2850_v17 }
 0x47c   : > { %1392 = vadd.xlane.f32.xlu1 %v1391_v56 }
 0x493   : > { %v1044_v11 = vpop.xlane.xlu0 %1043 }
 0x494   : > { %2766 = vrcp.f32 %v1044_v11 }
 0x49b   : > { %v1155_v14 = vpop.xlane.xlu0 %1154 }
 0x4a1   : > { %v2767_v21 = vpop.eup %2766 }
 0x4cc   : > { %v3252_v59 = vpop.f32.mrf.mxu0  ;;  %v1504_v13 = vpop.xlane.xlu1 %1503 }
 0x4cd   : > { %2768 = vrcp.f32 %v1504_v13  ;;  %v2435_v13 = vld [vmem:[%s3409_s20] ss:$0 sm:$0xff] }
 0x4ce   : > { %v2538_v60 = vpop.f32.mrf.mxu0  ;;  %2770 = vrcp.f32 %v1155_v14 }
 0x4d0   : > { %v980_v61 = vpop.f32.mrf.mxu0 }
 0x4d2   : > { %v2539_v62 = vpop.f32.mrf.mxu0 }
 0x4d4   : > { %v1088_v63 = vpop.f32.mrf.mxu0 }
 0x4d5   : > { %v1096_v24 = vmul.f32 %v2767_v21, %v1088_v63 }
 0x4d6   : > { %v2550_v0 = vpop.f32.mrf.mxu0 }
 0x4d8   : > { %v1091_v1 = vpop.f32.mrf.mxu0  ;;  %v1615_v15 = vpop.xlane.xlu0 %1614 }
 0x4d9   : > { %2772 = vrcp.f32 %v1615_v15 }
 0x4da   : > { %v2551_v4 = vpop.f32.mrf.mxu0  ;;  %v2769_v22 = vpop.eup %2768 }
 0x4db   : > { %v2771_v31 = vpop.eup %2770 }
 0x4dc   : > { %v1199_v5 = vpop.f32.mrf.mxu0  ;;  %v1266_v40 = vpop.xlane.xlu0 %1265 }
 0x4dd   : > { %v1207_v34 = vmul.f32 %v2771_v31, %v1199_v5  ;;  %2774 = vrcp.f32 %v1266_v40 }
 0x4de   : > { %v2562_v6 = vpop.f32.mrf.mxu0 }
 0x4e0   : > { %v1202_v7 = vpop.f32.mrf.mxu0  ;;  %v932_v54 = vpop.xlane.xlu0 %931 }
 0x4e2   : > { %v2563_v8 = vpop.f32.mrf.mxu0 }
 0x4e4   : > { %v1310_v9 = vpop.f32.mrf.mxu0 }
 0x4e6   : > { %v2574_v44 = vpop.f32.mrf.mxu0  ;;  %v2773_v32 = vpop.eup %2772 }
 0x4e8   : > { %v1313_v12 = vpop.f32.mrf.mxu0 }
 0x4ea   : > { %v2575_v10 = vpop.f32.mrf.mxu0  ;;  %v2775_v45 = vpop.eup %2774 }
 0x4eb   : > { %v1318_v48 = vmul.f32 %v2775_v45, %v1310_v9 }
 0x500   : > { %v1437_v16 = vpop.f32.mrf.mxu0 }
 0x501   : > { %v1726_v41 = vpop.xlane.xlu1 %1725 }
 0x502   : > { %v2586_v18 = vpop.f32.mrf.mxu0  ;;  %2776 = vrcp.f32 %v1726_v41 }
 0x503   : > { %2778 = vrcp.f32 %v932_v54  ;;  %v2739_v54 = vld [vmem:[%s3032_s19 + $0x30] sm:$0xff]  }
 0x504   : > { %v1440_v19 = vpop.f32.mrf.mxu0 }
 0x505   : > { %v1393_v55 = vpop.xlane.xlu1 %1392 }
 0x506   : > { %v2587_v20 = vpop.f32.mrf.mxu0  ;;  %2780 = vrcp.f32 %v1393_v55  ;;  %v2740_v55 = vld [vmem:[%s3032_s19 + $0x28] sm:$0xff]  }
 0x508   : > { %v1548_v23 = vpop.f32.mrf.mxu0 }
 0x509   : > { %v1556_v25 = vmul.f32 %v2769_v22, %v1548_v23 }
 0x50a   : > { %v2598_v26 = vpop.f32.mrf.mxu0 }
 0x50b   : > { %v2717_v28 = vpack.i.bf16 %v1556_v25, %v1096_v24 }
 0x50c   : > { %v1551_v29 = vpop.f32.mrf.mxu0 }
 0x50d   : > { %2718 = vrot.lane.b32.xlu0 %v2717_v28, %s2863_s28 }
 0x50e   : > { %v2599_v30 = vpop.f32.mrf.mxu0 }
 0x50f   : > { %v2777_v46 = vpop.eup %2776 }
 0x510   : > { %v1659_v33 = vpop.f32.mrf.mxu0  ;;  %v2779_v57 = vpop.eup %2778 }
 0x511   : > { %v1667_v35 = vmul.f32 %v2773_v32, %v1659_v33  ;;  %v985_v0 = vmul.f32 %v2779_v57, %v3252_v59  ;;  %v2736_v32 = vld [vmem:[%s3022_s4 + $0x8] sm:$0xff]   ;;  %v2737_v33 = vld [vmem:[%s3022_s4] sm:$0xff]   ;;  %v2742_v57 = vld [vmem:[%s3032_s19 + $0x18] sm:$0xff]  }
 0x512   : > { %v2610_v36 = vpop.f32.mrf.mxu0  ;;  %2633 = vmatpush3.bf16.msra.mxu0 %v2736_v32 }
 0x513   : > { %v2722_v37 = vpack.i.bf16 %v1667_v35, %v1207_v34  ;;  %v2781_v56 = vpop.eup %2780  ;;  %2634 = vmatprep.subr.bf16.mxu0 %v2850_v17 }
 0x514   : > { %v1662_v38 = vpop.f32.mrf.mxu0  ;;  %v1445_v1 = vmul.f32 %v2781_v56, %v1437_v16  ;;  %v2744_v56 = vld [vmem:[%s3032_s19 + $0x8] sm:$0xff]  }
 0x515   : > { %2723 = vrot.lane.b32.xlu1 %v2722_v37, %s2864_s25  ;;  %s3411_s25 = sld [smem:[#allocation13_spill]] (!%p2453_p6) }
 0x516   : > { %v2611_v39 = vpop.f32.mrf.mxu0  ;;  %2635 = vmatpush3.bf16.msra.mxu0 %v2737_v33 }
 0x539   : > { %v1770_v47 = vpop.f32.mrf.mxu0 }
 0x53a   : > { %v1778_v49 = vmul.f32 %v2777_v46, %v1770_v47 }
 0x53b   : > { %v2622_v50 = vpop.f32.mrf.mxu0 }
 0x53c   : > { %v2727_v51 = vpack.i.bf16 %v1778_v49, %v1318_v48  ;;  %v2437_v48 = vld [vmem:[%s729_s27] ss:$0 sm:$0xff] }
 0x53d   : > { %v1773_v52 = vpop.f32.mrf.mxu0 }
 0x53e   : > { %2728 = vrot.lane.b32.xlu1 %v2727_v51, %s2865_s15 }
 0x53f   : > { %v2623_v53 = vpop.f32.mrf.mxu0 }
 0x540   : > { %v2738_v53 = vld [vmem:[%s3032_s19 + $0x38] sm:$0xff]  }
 0x57f   : > { %v2719_v43 = vpop.permute.xlu0 %2718 }
 0x580   : > { %v2721_v60 = vunpack.i.h.bf16 %v2719_v43  ;;  %v2720_v61 = vunpack.i.l.bf16 %v2719_v43  ;;  %v2741_v43 = vld [vmem:[%s3032_s19 + $0x20] sm:$0xff]  }
 0x582   : > { %v1791_v5 = vsel %vm877_vm3, %v1445_v1, %v2721_v60  ;;  %v1331_v6 = vsel %vm877_vm3, %v985_v0, %v2720_v61  ;;  %v2745_v60 = vld [vmem:[%s3032_s19] sm:$0xff]  }
 0x583   : > { %v2438_v61 = vld [vmem:[%s737_s6] ss:$0 sm:$0xff] }
 0x587   : > { %v2724_v58 = vpop.permute.xlu1 %2723 }
 0x588   : > { %v2726_v62 = vunpack.i.h.bf16 %v2724_v58  ;;  %v2725_v63 = vunpack.i.l.bf16 %v2724_v58  ;;  %v2743_v58 = vld [vmem:[%s3032_s19 + $0x10] sm:$0xff]  }
 0x58a   : > { %v1792_v9 = vsel %vm1332_vm5, %v1791_v5, %v2726_v62  ;;  %v1333_v44 = vsel %vm1332_vm5, %v1331_v6, %v2725_v63 }
 0x5b0   : > { %v2729_v4 = vpop.permute.xlu1 %2728 }
 0x5b1   : > { %v2731_v7 = vunpack.i.h.bf16 %v2729_v4  ;;  %v2730_v8 = vunpack.i.l.bf16 %v2729_v4 }
 0x5b3   : > { %v1793_v12 = vsel %vm1334_vm6, %v1792_v9, %v2731_v7  ;;  %v1335_v10 = vsel %vm1334_vm6, %v1333_v44, %v2730_v8 }
 0x5b4   : > { %v1794_v11 = vpack.c.bf16 %v1793_v12, %v1335_v10 }
 0x5b6   : > { %2629 = vmatmul.mubr.msk.bf16.vlgmr.msra.gmra.mxu1 %vm760_vm1, %v1794_v11 }
 0x5b7   : > { %2656 = vmatprep.mubr.msk.bf16.mxu1 %vm2851_vm2, %v2850_v17  ;;  %2641 = vmatpush3.bf16.msra.mxu1 %v2738_v53 }
 0x5b8   : > { %2642 = vmatprep.subr.bf16.mxu1 %v2850_v17 }
 0x5bb   : > { %2643 = vmatpush3.bf16.msra.mxu1 %v2739_v54 }
 0x5bc   : > { %2644 = vmatprep.subr.bf16.mxu1 %v2850_v17 }
 0x5bf   : > { %2645 = vmatpush3.bf16.msra.mxu1 %v2740_v55 }
 0x5c0   : > { %2646 = vmatprep.subr.bf16.mxu1 %v2850_v17 }
 0x5c3   : > { %2647 = vmatpush3.bf16.msra.mxu1 %v2741_v43 }
 0x5c4   : > { %2648 = vmatprep.subr.bf16.mxu1 %v2850_v17 }
 0x5c7   : > { %2649 = vmatpush3.bf16.msra.mxu1 %v2742_v57 }
 0x5c8   : > { %2650 = vmatprep.subr.bf16.mxu1 %v2850_v17 }
 0x5cb   : > { %2651 = vmatpush3.bf16.msra.mxu1 %v2743_v58 }
 0x5cc   : > { %2652 = vmatprep.subr.bf16.mxu1 %v2850_v17 }
 0x5cf   : > { %2653 = vmatpush3.bf16.msra.mxu1 %v2744_v56 }
 0x5d0   : > { %2654 = vmatprep.subr.bf16.mxu1 %v2850_v17 }
 0x5d3   : > { %2655 = vmatpush3.bf16.msra.mxu1 %v2745_v60 }
 0x676   : > { %v1848_v59 = vpop.f32.mrf.mxu1 }
 0x677   : > { %v1855_v14 = vadd.f32 %v1848_v59, %v3045_v2 }
 0x678   : > { %v2630_v15 = vpop.f32.mrf.mxu1 }
 0x679   : > { %v3270_v16 = vadd.f32 %v2435_v13, %v1855_v14 }
 0x67a   : > { %v1851_v18 = vpop.f32.mrf.mxu1 }
 0x67b   : > { %v1856_v19 = vadd.f32 %v1851_v18, %v3047_v3  ;;  %v1868_v20 = vsel %vm760_vm1, %v3270_v16, 0.0  ;;  %v2444_v18 = vld [vmem:[%s745_s22] ss:$0 sm:$0xff] }
 0x67c   : > { %1869 = vadd.xlane.f32.xlu1 %v1868_v20  ;;  %v2631_v21 = vpop.f32.mrf.mxu1 }
 0x67d   : > { %v3275_v22 = vadd.f32 %v2435_v13, %v1856_v19 }
 0x67f   : > { %v1871_v23 = vsel %vm760_vm1, %v3275_v22, 0.0 }
 0x680   : > { %1872 = vadd.xlane.f32.xlu0 %v1871_v23 }
 0x705   : > { %v1870_v2 = vpop.xlane.xlu1 %1869 }
 0x706   : > { %v1874_v24 = vmul.f32 0.03125, %v1870_v2 }
 0x708   : > { %v1876_v25 = vsub.f32 %v3270_v16, %v1874_v24 }
 0x709   : > { %v1873_v26 = vpop.xlane.xlu0 %1872 }
 0x70a   : > { %v1875_v27 = vmul.f32 0.03125, %v1873_v26  ;;  %v1878_v3 = vmul.f32 %v1876_v25, %v1876_v25 }
 0x70c   : > { %v1877_v28 = vsub.f32 %v3275_v22, %v1875_v27  ;;  %v1880_v29 = vsel %vm760_vm1, %v1878_v3, 0.0 }
 0x70d   : > { %1881 = vadd.xlane.f32.xlu0 %v1880_v29 }
 0x70e   : > { %v1879_v30 = vmul.f32 %v1877_v28, %v1877_v28 }
 0x710   : > { %v1883_v31 = vsel %vm760_vm1, %v1879_v30, 0.0 }
 0x711   : > { %1884 = vadd.xlane.f32.xlu0 %v1883_v31 }
 0x796   : > { %v1882_v34 = vpop.xlane.xlu0 %1881 }
 0x797   : > { %v1886_v35 = vmul.f32 0.03125, %v1882_v34 }
 0x799   : > { %v1888_v36 = vadd.f32 1e-05, %v1886_v35 }
 0x79a   : > { %v1885_v37 = vpop.xlane.xlu0 %1884 }
 0x79b   : > { %2782 = vrsqrt.f32 %v1888_v36  ;;  %v1887_v38 = vmul.f32 0.03125, %v1885_v37 }
 0x79d   : > { %v1889_v39 = vadd.f32 1e-05, %v1887_v38 }
 0x79f   : > { %2784 = vrsqrt.f32 %v1889_v39 }
 0x7a8   : > { %v2783_v40 = vpop.eup %2782 }
 0x7a9   : > { %v1892_v41 = vmul.f32 %v2783_v40, %v1876_v25 }
 0x7ab   : > { %v1900_v47 = vmul.f32 %v2436_v42, %v1892_v41 }
 0x7ac   : > { %v2785_v45 = vpop.eup %2784 }
 0x7ad   : > { %v1893_v46 = vmul.f32 %v2785_v45, %v1877_v28  ;;  %v1908_v50 = vadd.f32 %v2437_v48, %v1900_v47 }
 0x7af   : > { %v1901_v49 = vmul.f32 %v2436_v42, %v1893_v46 }
 0x7b1   : > { %v1909_v51 = vadd.f32 %v2437_v48, %v1901_v49 }
 0x7b3   : > { %v1910_v52 = vpack.c.bf16 %v1909_v51, %v1908_v50 }
 0x7b5   : > { %2637 = vmatmul.mubr.msk.bf16.vlgmr.msra.gmra.mxu0 %vm760_vm1, %v1910_v52 }
 0x875   : > { %v1971_v62 = vpop.f32.mrf.mxu0 }
 0x876   : > { %v1972_v63 = vadd.f32 %v2438_v61, %v1971_v62 }
 0x877   : > { %v2638_v0 = vpop.f32.mrf.mxu0 }
 0x878   : > { %v2442_v1 = vmul.f32 -1.702, %v1972_v63 }
 0x879   : > { %v1974_v4 = vpop.f32.mrf.mxu0 }
 0x87a   : > { %v1982_v5 = vmul.f32 1.442695, %v2442_v1  ;;  %v1975_v6 = vadd.f32 %v2438_v61, %v1974_v4 }
 0x87b   : > { %v2639_v7 = vpop.f32.mrf.mxu0 }
 0x87c   : > { %2786 = vpow2.f32 %v1982_v5  ;;  %v2443_v8 = vmul.f32 -1.702, %v1975_v6 }
 0x87e   : > { %v1984_v9 = vmul.f32 1.442695, %v2443_v8 }
 0x880   : > { %2788 = vpow2.f32 %v1984_v9 }
 0x889   : > { %v2787_v17 = vpop.eup %2786 }
 0x88a   : > { %v1986_v44 = vadd.f32 1.0, %v2787_v17 }
 0x88c   : > { %2790 = vrcp.f32 %v1986_v44 }
 0x88d   : > { %v2789_v12 = vpop.eup %2788 }
 0x88e   : > { %v1987_v10 = vadd.f32 1.0, %v2789_v12 }
 0x890   : > { %2792 = vrcp.f32 %v1987_v10 }
 0x899   : > { %v2791_v11 = vpop.eup %2790 }
 0x89a   : > { %v1992_v13 = vmul.f32 %v2791_v11, %v1972_v63 }
 0x89d   : > { %v2793_v59 = vpop.eup %2792 }
 0x89e   : > { %v1993_v14 = vmul.f32 %v2793_v59, %v1975_v6 }
 0x8a0   : > { %v1994_v15 = vpack.c.bf16 %v1993_v14, %v1992_v13 }
 0x8a2   : > { %2657 = vmatmul.mubr.bf16.vlgmr.msra.gmra.mxu1 %v1994_v15 }
 0x962   : > { %v2100_v19 = vpop.f32.mrf.mxu1 }
 0x963   : > { %v2101_v20 = vadd.f32 %v2444_v18, %v2100_v19 }
 0x964   : > { %v2658_v21 = vpop.f32.mrf.mxu1 }
 0x965   : > { %v2107_v23 = vadd.f32 %v2101_v20, %v3270_v16 }
 0x966   : > { %v2103_v2 = vpop.f32.mrf.mxu1 }
 0x967   : > { %2109 = vst.msk [vmem:[#allocation2] sm:$0xff] %vm760_vm1, %v2107_v23  ;;  %v2104_v24 = vadd.f32 %v2444_v18, %v2103_v2  ;;  %2114 = sbr.rel (%p2453_p6) target bundleno = 2924 (0xb6c), region = 96 }
 0x968   : > { %v2659_v25 = vpop.f32.mrf.mxu1 }
 0x969   : > { %v2108_v26 = vadd.f32 %v2104_v24, %v3275_v22 }
 0x96b   : > { %2110 = vst.msk [vmem:[#allocation2 + $0x8] sm:$0xff] %vm760_vm1, %v2108_v26 }
 0x96c   : > { %v2116_v27 = vrot.slane %v2107_v23, 5  ;;  %v2119_v3 = vrot.slane %v2108_v26, 4  ;;  %vm2121_vm7 = vcmask 1040384   ;;  %vm2125_vm8 = vcmask 254976   ;;  %v2794_v22 = vld [vmem:[%s3410_s30 + $0x8] sm:$0xff]   ;;  %v2795_v35 = vld [vmem:[%s3410_s30] sm:$0xff]  }
 0x96d   : > { %v2866_v34 = vmov 0.0   ;;  %vm2867_vm9 = vmmov 0   ;;  %v2454_v40 = vld [vmem:[%s3411_s25] ss:$0 sm:$0xff] }
 0x96e   : > { %v2122_v28 = vsel %vm2121_vm7, %v2116_v27, %v2119_v3  ;;  %2660 = vmatprep.subr.bf16.mxu0 %v2866_v34  ;;  %2664 = vmatprep.mubr.msk.bf16.mxu0 %vm2867_vm9, %v2866_v34  ;;  %v2455_v42 = vld [vmem:[%s3412_s18] ss:$0 sm:$0xff] }
 0x96f   : > { %v2126_v29 = vsel %vm2125_vm8, %v2122_v28, 0.0  ;;  %2661 = vmatpush3.bf16.msra.mxu0 %v2794_v22 }
 0x970   : > { %2127 = vadd.xlane.f32.xlu0 %v2126_v29  ;;  %2662 = vmatprep.subr.bf16.mxu0 %v2866_v34 }
 0x973   : > { %2663 = vmatpush3.bf16.msra.mxu0 %v2795_v35 }
 0x9f9   : > { %v2128_v16 = vpop.xlane.xlu0 %2127 }
 0x9fa   : > { %v2129_v30 = vmul.f32 0.03125, %v2128_v16 }
 0x9fc   : > { %v2130_v31 = vsub.f32 %v2122_v28, %v2129_v30 }
 0x9fe   : > { %v2131_v32 = vmul.f32 %v2130_v31, %v2130_v31 }
 0xa00   : > { %v2132_v33 = vsel %vm2125_vm8, %v2131_v32, 0.0 }
 0xa01   : > { %2133 = vadd.xlane.f32.xlu0 %v2132_v33 }
 0xa8a   : > { %v2134_v36 = vpop.xlane.xlu0 %2133 }
 0xa8b   : > { %v2135_v37 = vmul.f32 0.03125, %v2134_v36 }
 0xa8d   : > { %v2136_v38 = vadd.f32 1e-05, %v2135_v37 }
 0xa8f   : > { %2796 = vrsqrt.f32 %v2136_v38 }
 0xa9c   : > { %v2797_v39 = vpop.eup %2796 }
 0xa9d   : > { %v2138_v41 = vmul.f32 %v2797_v39, %v2130_v31 }
 0xa9f   : > { %v2145_v45 = vmul.f32 %v2454_v40, %v2138_v41 }
 0xaa1   : > { %v2152_v46 = vadd.f32 %v2455_v42, %v2145_v45 }
 0xaa3   : > { %v2153_v47 = vpack.c.bf16 %v2152_v46, %v2152_v46 }
 0xaa5   : > { %2665 = vmatmul.mubr.msk.bf16.vlgmr.msra.gmra.mxu0 %vm760_vm1, %v2153_v47 }
 0xb65   : > { %v2207_v48 = vpop.f32.mrf.mxu0 }
 0xb66   : > { %2213 = vst.msk [vmem:[#allocation3] sm:$0x3] %vm2125_vm8, %v2207_v48 }
 0xb67   : > { %v2666_v49 = vpop.f32.mrf.mxu0 }
 0xb69   : > { %v2210_v50 = vpop.f32.mrf.mxu0 }
 0xb6b   : > { %v2667_v51 = vpop.f32.mrf.mxu0 }
 0xb6c PF: > { %s3413_s20 = sld [smem:[#allocation7_spill]]  ;;  %s2868_s4 = smov [#allocation3]  }
 0xb6d   : > { %s2223_s21 = sshll.u32 %s2868_s4, 4  ;;  %s2224_s21 = int_to_ptr.vmem [resolvable:$true] %s2223_s21 }
 0xb6e   : > { %s2798_s14 = scalar_lea.vmem %s2224_s21, 32  ;;  %p2805_p11 = scmp.lt.s32.totalorder %s2224_s21, %s2224_s21 }
 0xb6f   : > { %p2799_p8 = scmp.ne.s32.totalorder %s2224_s21, %s2798_s14  ;;  %p2806_p12 = scmp.lt.s32.totalorder %s2798_s14, %s2798_s14 }
 0xb71   : > { %p2807_p13 = por %p2806_p12, %p2805_p11 }
 0xb72   : > { %s3414_s1 = sadd.s32 4294967295, %s3413_s20  }
 0xb73   : > { %p3345_p7 = scmp.eq.s32.totalorder %s3414_s1, 1 }
 0xb75   : > { %p2800_p9 = pnand %p2799_p8, %p3345_p7 }
 0xb77   : > { %p2801_p10 = pneg %p2800_p9 }
 0xb79   : > { %p2808_p0 = pnand %p2807_p13, %p2801_p10 }
 0xb7b   : > { %2811 = shalt.err (!%p2808_p0)
}
 0xb7c   : > { %s3416_s19 = sld [smem:[#allocation16_spill]] }
 0xb82   : > { %2669 = dma.vmem_to_hbm [thread:$0]  (%p3345_p7), %s2224_s21, 32, %s3416_s19, [#allocation4]  }
 0xb83   : > { %2835 = dma.done.wait (%p3345_p7), [#allocation4], 32  }
 0xb84   : > { %2837 = vsyncadd (%p3345_p7), [#allocation4], 4294967264 }
 0xb85 PF: > { %s3417_s29 = sld [smem:[#allocation7_spill]] }
 0xb86   : > { %s3418_s24 = sld [smem:[#allocation6_spill]] }
 0xb87   : > { %s3419_s25 = sld [smem:[#allocation8_spill]] }
 0xb8b   : > { %s28_s26 = sadd.s32 1, %s3417_s29  }
 0xb8c   : > { %p25_p1 = scmp.ge.s32.totalorder %s28_s26, 4  }
 0xb8e   :  { %27 = sbr.rel (!%p25_p1) target bundleno = 11 (0xb), region = 160 }
 0xb93   :  { %2236 = vsyncpa [#allocation4], 1 }
 0xb94   :  { %2238 = vsyncpa [#allocation4 + $0x1], 1 }

</bundles_post_ra>
